<compile_context>
chip_gen: v7x
topology: tpu7x:2x2x1
jax: 0.10.0
libtpu: 0.0.40
codegen_flags: <defaults>
</compile_context>

<pallas_src>
import functools
import math

import jax
import jax.numpy as jnp
from jax.experimental import pallas as pl
from jax.experimental.pallas import tpu as pltpu


def _round_up(x, m):
    return ((x + m - 1) // m) * m


def _choose_tile(batch, row_align=16):
    """Row-tile size TB (multiple of 16 for bf16 sublane packing) and padded
    batch BP.  For batches larger than one tile, keep the grid at >= 2 steps so
    the ("parallel",) axis can be sharded over both v7x TensorCores (costless
    on v5e/v6e)."""
    if batch <= row_align:
        tb = row_align
    else:
        n_steps = max(2, -(-batch // 128))
        tb = min(128, _round_up(-(-batch // n_steps), row_align))
    bp = _round_up(batch, tb)
    return tb, bp


# ----------------------------- Pallas kernel ------------------------------

def _gat_layer_kernel(h_ref, r_ref, t_ref,
                      wa1h_ref, wa1r_ref, wa2_ref, wa3_ref,
                      wx_ref, bx_ref,
                      w1_ref, b1_ref, w2_ref, b2_ref,
                      out_ref):
    """One GAT message pass + Bi-Interaction aggregation for a tile of TB rows.

    h_ref  : (TB, D) bf16      base ("head") embedding per row
    r_ref  : (N, TB, D) bf16   relation embeddings, neighbor-major
    t_ref  : (N, TB, D) bf16   tail (neighbor) entity embeddings, neighbor-major
    weights: attention MLP split halves (bf16), per-head Wx (bf16), padded
             Bi-Interaction W1/W2 (bf16); biases / wa3 in f32.
    out_ref: (TB, OUT_P) f32   OUT_P = 2*D padded up to a multiple of 128
    """
    f32 = jnp.float32
    bf16 = jnp.bfloat16
    n_nb, tb, d = r_ref.shape
    n_heads = wx_ref.shape[1] // wx_ref.shape[0]

    def leaky(x):
        return jnp.where(x > 0, x, 0.2 * x)

    h_bf = h_ref[...]                                           # (TB, D) bf16
    h32 = h_bf.astype(f32)

    # ---- attention MLP, flattened over (neighbor, row) -------------------
    # cat(h, r) @ Wa1 == h @ Wa1_h + r @ Wa1_r  (h term computed once per row)
    h1 = jnp.dot(h_bf, wa1h_ref[...], preferred_element_type=f32)      # (TB, D)

    r_flat = r_ref[...].reshape(n_nb * tb, d)                          # bf16
    a1 = jnp.dot(r_flat, wa1r_ref[...], preferred_element_type=f32)    # (N*TB, D)
    a1 = jnp.maximum(a1.reshape(n_nb, tb, d) + h1[None, :, :], 0.0)    # ReLU

    a2 = jnp.dot(a1.reshape(n_nb * tb, d).astype(bf16), wa2_ref[...],
                 preferred_element_type=f32)
    a2 = jnp.maximum(a2, 0.0).reshape(n_nb, tb, d)                     # ReLU

    # final Linear(D, 1): VPU multiply + lane reduce -> (N, TB, 1)
    score = jnp.sum(a2 * wa3_ref[...], axis=-1, keepdims=True)

    # sigmoid (end of the attention Sequential) then softmax over neighbors.
    # sigmoid output is bounded in (0, 1), so max-subtraction is unnecessary.
    att = jax.nn.sigmoid(score)
    e = jnp.exp(att)
    denom = jnp.sum(e, axis=0, keepdims=True)                          # (1, TB, 1)
    w = e * pl.reciprocal(denom, approx=True)                          # (N, TB, 1)

    # attention-weighted neighbor sum: one vectorized multiply-reduce.
    pooled = jnp.sum(w * t_ref[...].astype(f32), axis=0)               # (TB, D)

    # per-head Wx (heads concatenated along the output dim), LeakyReLU(0.2)
    v = jnp.dot(pooled.astype(bf16), wx_ref[...],
                preferred_element_type=f32) + bx_ref[...]
    v = leaky(v)                                                       # (TB, H*D)

    # head-tiled base embedding (torch.cat([h]*n_heads, dim=1)), built in-kernel
    hh = jnp.concatenate([h32] * n_heads, axis=-1)                     # (TB, H*D)

    # Bi-Interaction: leakyrelu(W1(h+v)) + leakyrelu(W2(h*v)); W1/W2 are
    # zero-padded on the output dim so the store is lane-dense (128 lanes).
    s1 = jnp.dot((hh + v).astype(bf16), w1_ref[...],
                 preferred_element_type=f32) + b1_ref[...]
    s2 = jnp.dot((hh * v).astype(bf16), w2_ref[...],
                 preferred_element_type=f32) + b2_ref[...]
    out_ref[...] = leaky(s1) + leaky(s2)


def gat_aggregate_layer(h_bf, r_embs, t_embs, params, tb):
    """h_bf: (BP, D) bf16; r_embs/t_embs: (N, BP, D) bf16.  Returns (BP, 2D) f32."""
    n_nb, bp, d = t_embs.shape
    out_true = 2 * d
    out_pad = params['agg_w1'].shape[1]                   # multiple of 128

    weights = (params['att_w1_h'], params['att_w1_r'],
               params['att_w2'], params['att_w3_row'],
               params['wx_w'], params['wx_b'],
               params['agg_w1'], params['agg_b1'],
               params['agg_w2'], params['agg_b2'])

    def wspec(a):
        nd = a.ndim
        return pl.BlockSpec(a.shape, lambda b, _n=nd: (0,) * _n)

    out = pl.pallas_call(
        _gat_layer_kernel,
        out_shape=jax.ShapeDtypeStruct((bp, out_pad), jnp.float32),
        grid=(bp // tb,),
        in_specs=[
            pl.BlockSpec((tb, d), lambda b: (b, 0)),
            pl.BlockSpec((n_nb, tb, d), lambda b: (0, b, 0)),
            pl.BlockSpec((n_nb, tb, d), lambda b: (0, b, 0)),
        ] + [wspec(a) for a in weights],
        out_specs=pl.BlockSpec((tb, out_pad), lambda b: (b, 0)),
        compiler_params=pltpu.CompilerParams(
            dimension_semantics=("parallel",)),
        # TODO(synk): for much larger D / N / TB compute vmem_limit_bytes from
        # the actual tile footprint instead of relying on the scoped default.
    )(h_bf, r_embs, t_embs, *weights)
    return out[:, :out_true]


# ------------------------- parameter initialization -------------------------

def _xavier(key, shape):
    fan_in, fan_out = shape
    bound = math.sqrt(6.0 / (fan_in + fan_out))
    return jax.random.uniform(key, shape, jnp.float32, -bound, bound)


def _linear_wb(key, fan_in, fan_out):
    kw, kb = jax.random.split(key)
    bound = 1.0 / math.sqrt(fan_in)
    w = jax.random.uniform(kw, (fan_in, fan_out), jnp.float32, -bound, bound)
    b = jax.random.uniform(kb, (1, fan_out), jnp.float32, -bound, bound)
    return w, b


def init_kg_params(key, *, n_entitys, n_relations, e_dim, n_heads, n_neighbors):
    D, H = e_dim, n_heads
    keys = jax.random.split(key, 10 + H)
    bf16 = jnp.bfloat16

    ent = _xavier(keys[0], (n_entitys, D))
    rel = _xavier(keys[1], (n_relations, D))

    # nn.Embedding(..., max_norm=1): rows renormalized to max L2 norm 1.
    # TODO(synk): PyTorch renormalizes at every lookup; applied once at init
    # here (equivalent while the tables are frozen).
    def renorm(t):
        n = jnp.linalg.norm(t, axis=-1, keepdims=True)
        return t * jnp.minimum(1.0, 1.0 / jnp.maximum(n, 1e-12))
    ent, rel = renorm(ent), renorm(rel)

    # attention MLP (no biases): Linear(2D,D), Linear(D,D), Linear(D,1)
    att_w1 = _xavier(keys[2], (2 * D, D))
    att_w1_h, att_w1_r = att_w1[:D, :], att_w1[D:, :]     # split cat(h, r) halves
    att_w2 = _xavier(keys[3], (D, D))
    att_w3_row = _xavier(keys[4], (D, 1)).T               # (1, D) row vector

    # TODO(synk): the PyTorch code creates a *freshly random* nn.Linear(dim, dim)
    # (Wx) per head on every GATMessagePass call; here one deterministic Wx per
    # head is used and reused across calls/branches.
    wx_ws, wx_bs = [], []
    for h in range(H):
        w, b = _linear_wb(keys[5 + h], D, D)
        wx_ws.append(w)
        wx_bs.append(b)
    wx_w = jnp.concatenate(wx_ws, axis=1)                 # (D, H*D)
    wx_b = jnp.concatenate(wx_bs, axis=1)                 # (1, H*D)

    # Bi-Interaction: W1, W2 : Linear(e_dim*n_heads, e_dim*2), zero-padded on
    # the output dim to a multiple of 128 for a lane-dense kernel store.
    out_pad = _round_up(2 * D, 128)
    agg_w1, agg_b1 = _linear_wb(keys[5 + H], H * D, 2 * D)
    agg_w2, agg_b2 = _linear_wb(keys[6 + H], H * D, 2 * D)
    pad_cols = out_pad - 2 * D
    agg_w1 = jnp.pad(agg_w1, ((0, 0), (0, pad_cols)))
    agg_b1 = jnp.pad(agg_b1, ((0, 0), (0, pad_cols)))
    agg_w2 = jnp.pad(agg_w2, ((0, 0), (0, pad_cols)))
    agg_b2 = jnp.pad(agg_b2, ((0, 0), (0, pad_cols)))

    adj_key1, adj_key2 = jax.random.split(keys[7 + H])
    adj_entity = jax.random.randint(adj_key1, (n_entitys, n_neighbors),
                                    0, n_entitys, jnp.int32)
    adj_relation = jax.random.randint(adj_key2, (n_entitys, n_neighbors),
                                      0, n_relations, jnp.int32)

    return dict(entity_embs=ent,
                entity_embs_bf16=ent.astype(bf16),
                relation_embs_bf16=rel.astype(bf16),
                att_w1_h=att_w1_h.astype(bf16), att_w1_r=att_w1_r.astype(bf16),
                att_w2=att_w2.astype(bf16), att_w3_row=att_w3_row,
                wx_w=wx_w.astype(bf16), wx_b=wx_b,
                agg_w1=agg_w1.astype(bf16), agg_b1=agg_b1,
                agg_w2=agg_w2.astype(bf16), agg_b2=agg_b2,
                adj_entity=adj_entity, adj_relation=adj_relation)


# ------------------------------ forward glue ------------------------------

def _get_neighbor_ids(ids_p, adj_entity, adj_relation, n_iter):
    """ids_p: (BP,) padded ids.  Returns neighbor-major id arrays:
    entities[i]: (N**i, BP), relations[i]: (N**(i+1), BP)."""
    bp = ids_p.shape[0]
    entities = [ids_p.reshape(1, bp)]
    relations = []
    for h in range(n_iter):
        prev = entities[h]                                    # (k, BP)
        ne = jnp.take(adj_entity, prev, axis=0)               # (k, BP, N)
        nr = jnp.take(adj_relation, prev, axis=0)
        entities.append(jnp.transpose(ne, (0, 2, 1)).reshape(-1, bp))
        relations.append(jnp.transpose(nr, (0, 2, 1)).reshape(-1, bp))
    return entities, relations


def kg_branch(ids, params, n_iter, n_heads):
    del n_heads  # inferred in-kernel from the concatenated Wx weight shape
    B = ids.shape[0]
    tb, bp = _choose_tile(B)
    ids_p = jnp.pad(ids, (0, bp - B))                         # pad ids, not embs

    entities, relations = _get_neighbor_ids(ids_p, params['adj_entity'],
                                            params['adj_relation'], n_iter)
    ent_bf = params['entity_embs_bf16']
    rel_bf = params['relation_embs_bf16']
    # Gather directly into the neighbor-major, batch-padded, bf16 layout the
    # kernel consumes: no transpose / pad copies of the float tensors.
    t_embs = [jnp.take(ent_bf, e, axis=0) for e in entities]     # (k_i, BP, D)
    r_embs = [jnp.take(rel_bf, r, axis=0) for r in relations]    # (k_{i+1}, BP, D)
    # TODO(synk): for very large embedding tables, gather these rows inside the
    # kernel (PrefetchScalarGridSpec ids + manual DMA from pl.ANY tables) to
    # drop the remaining HBM round-trip of the gathered tensors.

    h_f32 = jnp.take(params['entity_embs'], ids, axis=0)         # (B, D) output emb
    vecs = [h_f32]
    base_bf = jnp.take(ent_bf, ids_p, axis=0)                    # hop-0 base (BP, D)
    for i in range(n_iter):
        if i > 0:
            base_bf = jnp.sum(t_embs[i].astype(jnp.float32),
                              axis=0).astype(jnp.bfloat16)
        out = gat_aggregate_layer(base_bf, r_embs[i], t_embs[i + 1], params, tb)
        vecs.append(out[:B])                                      # (B, 2D)

    # sum_aggregator with agg == 'concat': e_u = cat((embs[i], e_u), -1)
    e_u = vecs[0]
    for i in range(1, len(vecs)):
        e_u = jnp.concatenate([vecs[i], e_u], axis=-1)
    return e_u


def kg_forward(u1, u2, c, params, *, n_iter, n_heads):
    # Fuse the three branches (drug1, drug2, cell) into one 3B batch so the
    # Pallas GAT kernel runs once per hop on the combined batch.
    B = u1.shape[0]
    ids_all = jnp.concatenate([u1, u2, c], axis=0)
    emb_all = kg_branch(ids_all, params, n_iter, n_heads)
    drug1_embs = emb_all[:B]
    drug2_embs = emb_all[B:2 * B]
    cell_embs = emb_all[2 * B:]

    # combine/score tail is a handful of FLOPs — left to XLA (a standalone
    # pallas_call here costs more in launch overhead than the compute).
    combine_drug = jnp.maximum(drug1_embs, drug2_embs)
    logits = jnp.sum(combine_drug * cell_embs, axis=-1)
    return logits, combine_drug, cell_embs


# ---------------------------------- main -----------------------------------

if __name__ == "__main__":
    n_entitys, n_relations = 32, 8
    e_dim = 16          # e_dim == r_dim (attention consumes cat(h, r))
    n_heads = 2
    n_neighbors = 4
    n_iter = 2
    batch = 4

    key = jax.random.PRNGKey(0)
    pkey, dkey = jax.random.split(key)
    params = init_kg_params(pkey, n_entitys=n_entitys, n_relations=n_relations,
                            e_dim=e_dim, n_heads=n_heads,
                            n_neighbors=n_neighbors)

    k1, k2, k3 = jax.random.split(dkey, 3)
    u1 = jax.random.randint(k1, (batch,), 0, n_entitys, jnp.int32)
    u2 = jax.random.randint(k2, (batch,), 0, n_entitys, jnp.int32)
    c = jax.random.randint(k3, (batch,), 0, n_entitys, jnp.int32)

    forward = jax.jit(functools.partial(kg_forward, n_iter=n_iter, n_heads=n_heads))
    logits, combine_drug, cell_embs = forward(u1, u2, c, params)
    jax.block_until_ready((logits, combine_drug, cell_embs))

    feat = e_dim * (1 + 2 * n_iter)
    assert logits.shape == (batch,)
    assert combine_drug.shape == (batch, feat)
    assert cell_embs.shape == (batch, feat)
    assert bool(jnp.all(jnp.isfinite(logits)))
    print("KERNEL_OK")
</pallas_src>

<mosaic_0001>
module attributes {stable_mosaic.version = 11 : i64} {
  func.func @_gat_layer_kernel(%arg0: i32, %arg1: memref<16x16xbf16, #tpu.memory_space<vmem>>, %arg2: memref<16x16x16xbf16, #tpu.memory_space<vmem>>, %arg3: memref<16x16x16xbf16, #tpu.memory_space<vmem>>, %arg4: memref<16x16xbf16, #tpu.memory_space<vmem>>, %arg5: memref<16x16xbf16, #tpu.memory_space<vmem>>, %arg6: memref<16x16xbf16, #tpu.memory_space<vmem>>, %arg7: memref<1x16xf32, #tpu.memory_space<vmem>>, %arg8: memref<16x32xbf16, #tpu.memory_space<vmem>>, %arg9: memref<1x32xf32, #tpu.memory_space<vmem>>, %arg10: memref<32x128xbf16, #tpu.memory_space<vmem>>, %arg11: memref<1x128xf32, #tpu.memory_space<vmem>>, %arg12: memref<32x128xbf16, #tpu.memory_space<vmem>>, %arg13: memref<1x128xf32, #tpu.memory_space<vmem>>, %arg14: memref<16x128xf32, #tpu.memory_space<vmem>>) attributes {dimension_semantics = [#tpu.dimension_semantics<parallel>], iteration_bounds = array<i64: 1>, scalar_prefetch = 0 : i64, scratch_operands = 0 : i64, tpu.core_type = #tpu.core_type<tc>, window_params = [{transform_indices = @transform_0, window_bounds = array<i64: 16, 16>}, {transform_indices = @transform_1, window_bounds = array<i64: 16, 16, 16>}, {transform_indices = @transform_2, window_bounds = array<i64: 16, 16, 16>}, {pipeline_mode = #tpu.pipeline_mode<synchronous>, transform_indices = @transform_3, window_bounds = array<i64: 16, 16>}, {pipeline_mode = #tpu.pipeline_mode<synchronous>, transform_indices = @transform_4, window_bounds = array<i64: 16, 16>}, {pipeline_mode = #tpu.pipeline_mode<synchronous>, transform_indices = @transform_5, window_bounds = array<i64: 16, 16>}, {pipeline_mode = #tpu.pipeline_mode<synchronous>, transform_indices = @transform_6, window_bounds = array<i64: 1, 16>}, {pipeline_mode = #tpu.pipeline_mode<synchronous>, transform_indices = @transform_7, window_bounds = array<i64: 16, 32>}, {pipeline_mode = #tpu.pipeline_mode<synchronous>, transform_indices = @transform_8, window_bounds = array<i64: 1, 32>}, {pipeline_mode = #tpu.pipeline_mode<synchronous>, transform_indices = @transform_9, window_bounds = array<i64: 32, 128>}, {pipeline_mode = #tpu.pipeline_mode<synchronous>, transform_indices = @transform_10, window_bounds = array<i64: 1, 128>}, {pipeline_mode = #tpu.pipeline_mode<synchronous>, transform_indices = @transform_11, window_bounds = array<i64: 32, 128>}, {pipeline_mode = #tpu.pipeline_mode<synchronous>, transform_indices = @transform_12, window_bounds = array<i64: 1, 128>}, {transform_indices = @transform_13, window_bounds = array<i64: 16, 128>}]} {
    %c0 = arith.constant 0 : index
    %c0_0 = arith.constant 0 : index
    %0 = vector.load %arg1[%c0, %c0_0] : memref<16x16xbf16, #tpu.memory_space<vmem>>, vector<16x16xbf16>
    %1 = arith.extf %0 : vector<16x16xbf16> to vector<16x16xf32>
    %c0_1 = arith.constant 0 : index
    %c0_2 = arith.constant 0 : index
    %2 = vector.load %arg4[%c0_1, %c0_2] : memref<16x16xbf16, #tpu.memory_space<vmem>>, vector<16x16xbf16>
    %cst = arith.constant dense<0.000000e+00> : vector<16x16xf32>
    %3 = tpu.matmul %0, %2, %cst {dimension_numbers = #tpu.dot_dimension_numbers<[1], [0], [0], [1], [0, 0, 1, 1], [], []>} : vector<16x16xbf16>, vector<16x16xbf16>, vector<16x16xf32> -> vector<16x16xf32>
    %c0_3 = arith.constant 0 : index
    %c0_4 = arith.constant 0 : index
    %c0_5 = arith.constant 0 : index
    %4 = vector.load %arg2[%c0_3, %c0_4, %c0_5] : memref<16x16x16xbf16, #tpu.memory_space<vmem>>, vector<16x16x16xbf16>
    %5 = vector.shape_cast %4 : vector<16x16x16xbf16> to vector<256x16xbf16>
    %c0_6 = arith.constant 0 : index
    %c0_7 = arith.constant 0 : index
    %6 = vector.load %arg5[%c0_6, %c0_7] : memref<16x16xbf16, #tpu.memory_space<vmem>>, vector<16x16xbf16>
    %cst_8 = arith.constant dense<0.000000e+00> : vector<256x16xf32>
    %7 = tpu.matmul %5, %6, %cst_8 {dimension_numbers = #tpu.dot_dimension_numbers<[1], [0], [0], [1], [0, 0, 1, 1], [], []>} : vector<256x16xbf16>, vector<16x16xbf16>, vector<256x16xf32> -> vector<256x16xf32>
    %8 = vector.shape_cast %7 : vector<256x16xf32> to vector<16x16x16xf32>
    %9 = vector.shape_cast %3 : vector<16x16xf32> to vector<1x16x16xf32>
    %10 = vector.broadcast %9 : vector<1x16x16xf32> to vector<16x16x16xf32>
    %11 = arith.addf %8, %10 : vector<16x16x16xf32>
    %cst_9 = arith.constant 0.000000e+00 : f32
    %12 = vector.broadcast %cst_9 : f32 to vector<16x16x16xf32>
    %13 = arith.maximumf %11, %12 : vector<16x16x16xf32>
    %14 = vector.shape_cast %13 : vector<16x16x16xf32> to vector<256x16xf32>
    %15 = arith.truncf %14 : vector<256x16xf32> to vector<256x16xbf16>
    %c0_10 = arith.constant 0 : index
    %c0_11 = arith.constant 0 : index
    %16 = vector.load %arg6[%c0_10, %c0_11] : memref<16x16xbf16, #tpu.memory_space<vmem>>, vector<16x16xbf16>
    %cst_12 = arith.constant dense<0.000000e+00> : vector<256x16xf32>
    %17 = tpu.matmul %15, %16, %cst_12 {dimension_numbers = #tpu.dot_dimension_numbers<[1], [0], [0], [1], [0, 0, 1, 1], [], []>} : vector<256x16xbf16>, vector<16x16xbf16>, vector<256x16xf32> -> vector<256x16xf32>
    %cst_13 = arith.constant 0.000000e+00 : f32
    %18 = vector.broadcast %cst_13 : f32 to vector<256x16xf32>
    %19 = arith.maximumf %17, %18 : vector<256x16xf32>
    %20 = vector.shape_cast %19 : vector<256x16xf32> to vector<16x16x16xf32>
    %c0_14 = arith.constant 0 : index
    %c0_15 = arith.constant 0 : index
    %21 = vector.load %arg7[%c0_14, %c0_15] : memref<1x16xf32, #tpu.memory_space<vmem>>, vector<1x16xf32>
    %22 = vector.shape_cast %21 : vector<1x16xf32> to vector<1x1x16xf32>
    %23 = vector.broadcast %22 : vector<1x1x16xf32> to vector<16x16x16xf32>
    %24 = arith.mulf %20, %23 : vector<16x16x16xf32>
    %cst_16 = arith.constant dense<0.000000e+00> : vector<16x16xf32>
    %25 = vector.multi_reduction <add>, %24, %cst_16 [2] : vector<16x16x16xf32> to vector<16x16xf32>
    %26 = vector.shape_cast %25 : vector<16x16xf32> to vector<16x16x1xf32>
    %27 = arith.negf %26 : vector<16x16x1xf32>
    %28 = math.exp %27 : vector<16x16x1xf32>
    %cst_17 = arith.constant 1.000000e+00 : f32
    %29 = vector.broadcast %cst_17 : f32 to vector<16x16x1xf32>
    %30 = arith.addf %29, %28 : vector<16x16x1xf32>
    %31 = arith.divf %29, %30 : vector<16x16x1xf32>
    %32 = math.exp %31 : vector<16x16x1xf32>
    %cst_18 = arith.constant dense<0.000000e+00> : vector<16x1xf32>
    %33 = vector.multi_reduction <add>, %32, %cst_18 [0] : vector<16x16x1xf32> to vector<16x1xf32>
    %34 = vector.shape_cast %33 : vector<16x1xf32> to vector<1x16x1xf32>
    %35 = tpu.reciprocal %34 {approx = true} : vector<1x16x1xf32> -> vector<1x16x1xf32>
    %36 = vector.broadcast %35 : vector<1x16x1xf32> to vector<16x16x1xf32>
    %37 = arith.mulf %32, %36 : vector<16x16x1xf32>
    %c0_19 = arith.constant 0 : index
    %c0_20 = arith.constant 0 : index
    %c0_21 = arith.constant 0 : index
    %38 = vector.load %arg3[%c0_19, %c0_20, %c0_21] : memref<16x16x16xbf16, #tpu.memory_space<vmem>>, vector<16x16x16xbf16>
    %39 = arith.extf %38 : vector<16x16x16xbf16> to vector<16x16x16xf32>
    %40 = vector.broadcast %37 : vector<16x16x1xf32> to vector<16x16x16xf32>
    %41 = arith.mulf %40, %39 : vector<16x16x16xf32>
    %cst_22 = arith.constant dense<0.000000e+00> : vector<16x16xf32>
    %42 = vector.multi_reduction <add>, %41, %cst_22 [0] : vector<16x16x16xf32> to vector<16x16xf32>
    %43 = arith.truncf %42 : vector<16x16xf32> to vector<16x16xbf16>
    %c0_23 = arith.constant 0 : index
    %c0_24 = arith.constant 0 : index
    %44 = vector.load %arg8[%c0_23, %c0_24] : memref<16x32xbf16, #tpu.memory_space<vmem>>, vector<16x32xbf16>
    %cst_25 = arith.constant dense<0.000000e+00> : vector<16x32xf32>
    %45 = tpu.matmul %43, %44, %cst_25 {dimension_numbers = #tpu.dot_dimension_numbers<[1], [0], [0], [1], [0, 0, 1, 1], [], []>} : vector<16x16xbf16>, vector<16x32xbf16>, vector<16x32xf32> -> vector<16x32xf32>
    %c0_26 = arith.constant 0 : index
    %c0_27 = arith.constant 0 : index
    %46 = vector.load %arg9[%c0_26, %c0_27] : memref<1x32xf32, #tpu.memory_space<vmem>>, vector<1x32xf32>
    %47 = vector.broadcast %46 : vector<1x32xf32> to vector<16x32xf32>
    %48 = arith.addf %45, %47 : vector<16x32xf32>
    %cst_28 = arith.constant 0.000000e+00 : f32
    %49 = vector.broadcast %cst_28 : f32 to vector<16x32xf32>
    %50 = arith.cmpf ogt, %48, %49 : vector<16x32xf32>
    %cst_29 = arith.constant 2.000000e-01 : f32
    %51 = vector.broadcast %cst_29 : f32 to vector<16x32xf32>
    %52 = arith.mulf %51, %48 : vector<16x32xf32>
    %53 = arith.select %50, %48, %52 : vector<16x32xi1>, vector<16x32xf32>
    %54 = tpu.concatenate %1, %1 in 1 : vector<16x16xf32>, vector<16x16xf32> -> vector<16x32xf32>
    %55 = arith.addf %54, %53 : vector<16x32xf32>
    %56 = arith.truncf %55 : vector<16x32xf32> to vector<16x32xbf16>
    %c0_30 = arith.constant 0 : index
    %c0_31 = arith.constant 0 : index
    %57 = vector.load %arg10[%c0_30, %c0_31] : memref<32x128xbf16, #tpu.memory_space<vmem>>, vector<32x128xbf16>
    %cst_32 = arith.constant dense<0.000000e+00> : vector<16x128xf32>
    %58 = tpu.matmul %56, %57, %cst_32 {dimension_numbers = #tpu.dot_dimension_numbers<[1], [0], [0], [1], [0, 0, 1, 1], [], []>} : vector<16x32xbf16>, vector<32x128xbf16>, vector<16x128xf32> -> vector<16x128xf32>
    %c0_33 = arith.constant 0 : index
    %c0_34 = arith.constant 0 : index
    %59 = vector.load %arg11[%c0_33, %c0_34] : memref<1x128xf32, #tpu.memory_space<vmem>>, vector<1x128xf32>
    %60 = vector.broadcast %59 : vector<1x128xf32> to vector<16x128xf32>
    %61 = arith.addf %58, %60 : vector<16x128xf32>
    %62 = arith.mulf %54, %53 : vector<16x32xf32>
    %63 = arith.truncf %62 : vector<16x32xf32> to vector<16x32xbf16>
    %c0_35 = arith.constant 0 : index
    %c0_36 = arith.constant 0 : index
    %64 = vector.load %arg12[%c0_35, %c0_36] : memref<32x128xbf16, #tpu.memory_space<vmem>>, vector<32x128xbf16>
    %cst_37 = arith.constant dense<0.000000e+00> : vector<16x128xf32>
    %65 = tpu.matmul %63, %64, %cst_37 {dimension_numbers = #tpu.dot_dimension_numbers<[1], [0], [0], [1], [0, 0, 1, 1], [], []>} : vector<16x32xbf16>, vector<32x128xbf16>, vector<16x128xf32> -> vector<16x128xf32>
    %c0_38 = arith.constant 0 : index
    %c0_39 = arith.constant 0 : index
    %66 = vector.load %arg13[%c0_38, %c0_39] : memref<1x128xf32, #tpu.memory_space<vmem>>, vector<1x128xf32>
    %67 = vector.broadcast %66 : vector<1x128xf32> to vector<16x128xf32>
    %68 = arith.addf %65, %67 : vector<16x128xf32>
    %cst_40 = arith.constant 0.000000e+00 : f32
    %69 = vector.broadcast %cst_40 : f32 to vector<16x128xf32>
    %70 = arith.cmpf ogt, %61, %69 : vector<16x128xf32>
    %cst_41 = arith.constant 2.000000e-01 : f32
    %71 = vector.broadcast %cst_41 : f32 to vector<16x128xf32>
    %72 = arith.mulf %71, %61 : vector<16x128xf32>
    %73 = arith.select %70, %61, %72 : vector<16x128xi1>, vector<16x128xf32>
    %cst_42 = arith.constant 0.000000e+00 : f32
    %74 = vector.broadcast %cst_42 : f32 to vector<16x128xf32>
    %75 = arith.cmpf ogt, %68, %74 : vector<16x128xf32>
    %cst_43 = arith.constant 2.000000e-01 : f32
    %76 = vector.broadcast %cst_43 : f32 to vector<16x128xf32>
    %77 = arith.mulf %76, %68 : vector<16x128xf32>
    %78 = arith.select %75, %68, %77 : vector<16x128xi1>, vector<16x128xf32>
    %79 = arith.addf %73, %78 : vector<16x128xf32>
    %c0_44 = arith.constant 0 : index
    %c0_45 = arith.constant 0 : index
    %80 = vector.load %arg14[%c0_44, %c0_45] : memref<16x128xf32, #tpu.memory_space<vmem>>, vector<16x128xf32>
    tpu.vector_store %arg14[%c0_44, %c0_45], %79 {strides = array<i32>} : memref<16x128xf32, #tpu.memory_space<vmem>>, vector<16x128xf32>,
    return
  }
  func.func @transform_0(%arg0: i32) -> (i32, i32) {
    %c0_i32 = arith.constant 0 : i32
    %c0_i32_0 = arith.constant 0 : i32
    return %arg0, %c0_i32 : i32, i32
  }
  func.func @transform_1(%arg0: i32) -> (i32, i32, i32) {
    %c0_i32 = arith.constant 0 : i32
    %c0_i32_0 = arith.constant 0 : i32
    %c0_i32_1 = arith.constant 0 : i32
    return %c0_i32, %arg0, %c0_i32_0 : i32, i32, i32
  }
  func.func @transform_2(%arg0: i32) -> (i32, i32, i32) {
    %c0_i32 = arith.constant 0 : i32
    %c0_i32_0 = arith.constant 0 : i32
    %c0_i32_1 = arith.constant 0 : i32
    return %c0_i32, %arg0, %c0_i32_0 : i32, i32, i32
  }
  func.func @transform_3(%arg0: i32) -> (i32, i32) {
    %c0_i32 = arith.constant 0 : i32
    %c0_i32_0 = arith.constant 0 : i32
    %c0_i32_1 = arith.constant 0 : i32
    return %c0_i32, %c0_i32_0 : i32, i32
  }
  func.func @transform_4(%arg0: i32) -> (i32, i32) {
    %c0_i32 = arith.constant 0 : i32
    %c0_i32_0 = arith.constant 0 : i32
    %c0_i32_1 = arith.constant 0 : i32
    return %c0_i32, %c0_i32_0 : i32, i32
  }
  func.func @transform_5(%arg0: i32) -> (i32, i32) {
    %c0_i32 = arith.constant 0 : i32
    %c0_i32_0 = arith.constant 0 : i32
    %c0_i32_1 = arith.constant 0 : i32
    return %c0_i32, %c0_i32_0 : i32, i32
  }
  func.func @transform_6(%arg0: i32) -> (i32, i32) {
    %c0_i32 = arith.constant 0 : i32
    %c0_i32_0 = arith.constant 0 : i32
    %c0_i32_1 = arith.constant 0 : i32
    return %c0_i32, %c0_i32_0 : i32, i32
  }
  func.func @transform_7(%arg0: i32) -> (i32, i32) {
    %c0_i32 = arith.constant 0 : i32
    %c0_i32_0 = arith.constant 0 : i32
    %c0_i32_1 = arith.constant 0 : i32
    return %c0_i32, %c0_i32_0 : i32, i32
  }
  func.func @transform_8(%arg0: i32) -> (i32, i32) {
    %c0_i32 = arith.constant 0 : i32
    %c0_i32_0 = arith.constant 0 : i32
    %c0_i32_1 = arith.constant 0 : i32
    return %c0_i32, %c0_i32_0 : i32, i32
  }
  func.func @transform_9(%arg0: i32) -> (i32, i32) {
    %c0_i32 = arith.constant 0 : i32
    %c0_i32_0 = arith.constant 0 : i32
    %c0_i32_1 = arith.constant 0 : i32
    return %c0_i32, %c0_i32_0 : i32, i32
  }
  func.func @transform_10(%arg0: i32) -> (i32, i32) {
    %c0_i32 = arith.constant 0 : i32
    %c0_i32_0 = arith.constant 0 : i32
    %c0_i32_1 = arith.constant 0 : i32
    return %c0_i32, %c0_i32_0 : i32, i32
  }
  func.func @transform_11(%arg0: i32) -> (i32, i32) {
    %c0_i32 = arith.constant 0 : i32
    %c0_i32_0 = arith.constant 0 : i32
    %c0_i32_1 = arith.constant 0 : i32
    return %c0_i32, %c0_i32_0 : i32, i32
  }
  func.func @transform_12(%arg0: i32) -> (i32, i32) {
    %c0_i32 = arith.constant 0 : i32
    %c0_i32_0 = arith.constant 0 : i32
    %c0_i32_1 = arith.constant 0 : i32
    return %c0_i32, %c0_i32_0 : i32, i32
  }
  func.func @transform_13(%arg0: i32) -> (i32, i32) {
    %c0_i32 = arith.constant 0 : i32
    %c0_i32_0 = arith.constant 0 : i32
    return %arg0, %c0_i32 : i32, i32
  }
}

module attributes {stable_mosaic.version = 11 : i64} {
  func.func @_gat_layer_kernel(%arg0: i32, %arg1: memref<16x16xbf16, #tpu.memory_space<vmem>>, %arg2: memref<4x16x16xbf16, #tpu.memory_space<vmem>>, %arg3: memref<4x16x16xbf16, #tpu.memory_space<vmem>>, %arg4: memref<16x16xbf16, #tpu.memory_space<vmem>>, %arg5: memref<16x16xbf16, #tpu.memory_space<vmem>>, %arg6: memref<16x16xbf16, #tpu.memory_space<vmem>>, %arg7: memref<1x16xf32, #tpu.memory_space<vmem>>, %arg8: memref<16x32xbf16, #tpu.memory_space<vmem>>, %arg9: memref<1x32xf32, #tpu.memory_space<vmem>>, %arg10: memref<32x128xbf16, #tpu.memory_space<vmem>>, %arg11: memref<1x128xf32, #tpu.memory_space<vmem>>, %arg12: memref<32x128xbf16, #tpu.memory_space<vmem>>, %arg13: memref<1x128xf32, #tpu.memory_space<vmem>>, %arg14: memref<16x128xf32, #tpu.memory_space<vmem>>) attributes {dimension_semantics = [#tpu.dimension_semantics<parallel>], iteration_bounds = array<i64: 1>, scalar_prefetch = 0 : i64, scratch_operands = 0 : i64, tpu.core_type = #tpu.core_type<tc>, window_params = [{transform_indices = @transform_0, window_bounds = array<i64: 16, 16>}, {transform_indices = @transform_1, window_bounds = array<i64: 4, 16, 16>}, {transform_indices = @transform_2, window_bounds = array<i64: 4, 16, 16>}, {pipeline_mode = #tpu.pipeline_mode<synchronous>, transform_indices = @transform_3, window_bounds = array<i64: 16, 16>}, {pipeline_mode = #tpu.pipeline_mode<synchronous>, transform_indices = @transform_4, window_bounds = array<i64: 16, 16>}, {pipeline_mode = #tpu.pipeline_mode<synchronous>, transform_indices = @transform_5, window_bounds = array<i64: 16, 16>}, {pipeline_mode = #tpu.pipeline_mode<synchronous>, transform_indices = @transform_6, window_bounds = array<i64: 1, 16>}, {pipeline_mode = #tpu.pipeline_mode<synchronous>, transform_indices = @transform_7, window_bounds = array<i64: 16, 32>}, {pipeline_mode = #tpu.pipeline_mode<synchronous>, transform_indices = @transform_8, window_bounds = array<i64: 1, 32>}, {pipeline_mode = #tpu.pipeline_mode<synchronous>, transform_indices = @transform_9, window_bounds = array<i64: 32, 128>}, {pipeline_mode = #tpu.pipeline_mode<synchronous>, transform_indices = @transform_10, window_bounds = array<i64: 1, 128>}, {pipeline_mode = #tpu.pipeline_mode<synchronous>, transform_indices = @transform_11, window_bounds = array<i64: 32, 128>}, {pipeline_mode = #tpu.pipeline_mode<synchronous>, transform_indices = @transform_12, window_bounds = array<i64: 1, 128>}, {transform_indices = @transform_13, window_bounds = array<i64: 16, 128>}]} {
    %c0 = arith.constant 0 : index
    %c0_0 = arith.constant 0 : index
    %0 = vector.load %arg1[%c0, %c0_0] : memref<16x16xbf16, #tpu.memory_space<vmem>>, vector<16x16xbf16>
    %1 = arith.extf %0 : vector<16x16xbf16> to vector<16x16xf32>
    %c0_1 = arith.constant 0 : index
    %c0_2 = arith.constant 0 : index
    %2 = vector.load %arg4[%c0_1, %c0_2] : memref<16x16xbf16, #tpu.memory_space<vmem>>, vector<16x16xbf16>
    %cst = arith.constant dense<0.000000e+00> : vector<16x16xf32>
    %3 = tpu.matmul %0, %2, %cst {dimension_numbers = #tpu.dot_dimension_numbers<[1], [0], [0], [1], [0, 0, 1, 1], [], []>} : vector<16x16xbf16>, vector<16x16xbf16>, vector<16x16xf32> -> vector<16x16xf32>
    %c0_3 = arith.constant 0 : index
    %c0_4 = arith.constant 0 : index
    %c0_5 = arith.constant 0 : index
    %4 = vector.load %arg2[%c0_3, %c0_4, %c0_5] : memref<4x16x16xbf16, #tpu.memory_space<vmem>>, vector<4x16x16xbf16>
    %5 = vector.shape_cast %4 : vector<4x16x16xbf16> to vector<64x16xbf16>
    %c0_6 = arith.constant 0 : index
    %c0_7 = arith.constant 0 : index
    %6 = vector.load %arg5[%c0_6, %c0_7] : memref<16x16xbf16, #tpu.memory_space<vmem>>, vector<16x16xbf16>
    %cst_8 = arith.constant dense<0.000000e+00> : vector<64x16xf32>
    %7 = tpu.matmul %5, %6, %cst_8 {dimension_numbers = #tpu.dot_dimension_numbers<[1], [0], [0], [1], [0, 0, 1, 1], [], []>} : vector<64x16xbf16>, vector<16x16xbf16>, vector<64x16xf32> -> vector<64x16xf32>
    %8 = vector.shape_cast %7 : vector<64x16xf32> to vector<4x16x16xf32>
    %9 = vector.shape_cast %3 : vector<16x16xf32> to vector<1x16x16xf32>
    %10 = vector.broadcast %9 : vector<1x16x16xf32> to vector<4x16x16xf32>
    %11 = arith.addf %8, %10 : vector<4x16x16xf32>
    %cst_9 = arith.constant 0.000000e+00 : f32
    %12 = vector.broadcast %cst_9 : f32 to vector<4x16x16xf32>
    %13 = arith.maximumf %11, %12 : vector<4x16x16xf32>
    %14 = vector.shape_cast %13 : vector<4x16x16xf32> to vector<64x16xf32>
    %15 = arith.truncf %14 : vector<64x16xf32> to vector<64x16xbf16>
    %c0_10 = arith.constant 0 : index
    %c0_11 = arith.constant 0 : index
    %16 = vector.load %arg6[%c0_10, %c0_11] : memref<16x16xbf16, #tpu.memory_space<vmem>>, vector<16x16xbf16>
    %cst_12 = arith.constant dense<0.000000e+00> : vector<64x16xf32>
    %17 = tpu.matmul %15, %16, %cst_12 {dimension_numbers = #tpu.dot_dimension_numbers<[1], [0], [0], [1], [0, 0, 1, 1], [], []>} : vector<64x16xbf16>, vector<16x16xbf16>, vector<64x16xf32> -> vector<64x16xf32>
    %cst_13 = arith.constant 0.000000e+00 : f32
    %18 = vector.broadcast %cst_13 : f32 to vector<64x16xf32>
    %19 = arith.maximumf %17, %18 : vector<64x16xf32>
    %20 = vector.shape_cast %19 : vector<64x16xf32> to vector<4x16x16xf32>
    %c0_14 = arith.constant 0 : index
    %c0_15 = arith.constant 0 : index
    %21 = vector.load %arg7[%c0_14, %c0_15] : memref<1x16xf32, #tpu.memory_space<vmem>>, vector<1x16xf32>
    %22 = vector.shape_cast %21 : vector<1x16xf32> to vector<1x1x16xf32>
    %23 = vector.broadcast %22 : vector<1x1x16xf32> to vector<4x16x16xf32>
    %24 = arith.mulf %20, %23 : vector<4x16x16xf32>
    %cst_16 = arith.constant dense<0.000000e+00> : vector<4x16xf32>
    %25 = vector.multi_reduction <add>, %24, %cst_16 [2] : vector<4x16x16xf32> to vector<4x16xf32>
    %26 = vector.shape_cast %25 : vector<4x16xf32> to vector<4x16x1xf32>
    %27 = arith.negf %26 : vector<4x16x1xf32>
    %28 = math.exp %27 : vector<4x16x1xf32>
    %cst_17 = arith.constant 1.000000e+00 : f32
    %29 = vector.broadcast %cst_17 : f32 to vector<4x16x1xf32>
    %30 = arith.addf %29, %28 : vector<4x16x1xf32>
    %31 = arith.divf %29, %30 : vector<4x16x1xf32>
    %32 = math.exp %31 : vector<4x16x1xf32>
    %cst_18 = arith.constant dense<0.000000e+00> : vector<16x1xf32>
    %33 = vector.multi_reduction <add>, %32, %cst_18 [0] : vector<4x16x1xf32> to vector<16x1xf32>
    %34 = vector.shape_cast %33 : vector<16x1xf32> to vector<1x16x1xf32>
    %35 = tpu.reciprocal %34 {approx = true} : vector<1x16x1xf32> -> vector<1x16x1xf32>
    %36 = vector.broadcast %35 : vector<1x16x1xf32> to vector<4x16x1xf32>
    %37 = arith.mulf %32, %36 : vector<4x16x1xf32>
    %c0_19 = arith.constant 0 : index
    %c0_20 = arith.constant 0 : index
    %c0_21 = arith.constant 0 : index
    %38 = vector.load %arg3[%c0_19, %c0_20, %c0_21] : memref<4x16x16xbf16, #tpu.memory_space<vmem>>, vector<4x16x16xbf16>
    %39 = arith.extf %38 : vector<4x16x16xbf16> to vector<4x16x16xf32>
    %40 = vector.broadcast %37 : vector<4x16x1xf32> to vector<4x16x16xf32>
    %41 = arith.mulf %40, %39 : vector<4x16x16xf32>
    %cst_22 = arith.constant dense<0.000000e+00> : vector<16x16xf32>
    %42 = vector.multi_reduction <add>, %41, %cst_22 [0] : vector<4x16x16xf32> to vector<16x16xf32>
    %43 = arith.truncf %42 : vector<16x16xf32> to vector<16x16xbf16>
    %c0_23 = arith.constant 0 : index
    %c0_24 = arith.constant 0 : index
    %44 = vector.load %arg8[%c0_23, %c0_24] : memref<16x32xbf16, #tpu.memory_space<vmem>>, vector<16x32xbf16>
    %cst_25 = arith.constant dense<0.000000e+00> : vector<16x32xf32>
    %45 = tpu.matmul %43, %44, %cst_25 {dimension_numbers = #tpu.dot_dimension_numbers<[1], [0], [0], [1], [0, 0, 1, 1], [], []>} : vector<16x16xbf16>, vector<16x32xbf16>, vector<16x32xf32> -> vector<16x32xf32>
    %c0_26 = arith.constant 0 : index
    %c0_27 = arith.constant 0 : index
    %46 = vector.load %arg9[%c0_26, %c0_27] : memref<1x32xf32, #tpu.memory_space<vmem>>, vector<1x32xf32>
    %47 = vector.broadcast %46 : vector<1x32xf32> to vector<16x32xf32>
    %48 = arith.addf %45, %47 : vector<16x32xf32>
    %cst_28 = arith.constant 0.000000e+00 : f32
    %49 = vector.broadcast %cst_28 : f32 to vector<16x32xf32>
    %50 = arith.cmpf ogt, %48, %49 : vector<16x32xf32>
    %cst_29 = arith.constant 2.000000e-01 : f32
    %51 = vector.broadcast %cst_29 : f32 to vector<16x32xf32>
    %52 = arith.mulf %51, %48 : vector<16x32xf32>
    %53 = arith.select %50, %48, %52 : vector<16x32xi1>, vector<16x32xf32>
    %54 = tpu.concatenate %1, %1 in 1 : vector<16x16xf32>, vector<16x16xf32> -> vector<16x32xf32>
    %55 = arith.addf %54, %53 : vector<16x32xf32>
    %56 = arith.truncf %55 : vector<16x32xf32> to vector<16x32xbf16>
    %c0_30 = arith.constant 0 : index
    %c0_31 = arith.constant 0 : index
    %57 = vector.load %arg10[%c0_30, %c0_31] : memref<32x128xbf16, #tpu.memory_space<vmem>>, vector<32x128xbf16>
    %cst_32 = arith.constant dense<0.000000e+00> : vector<16x128xf32>
    %58 = tpu.matmul %56, %57, %cst_32 {dimension_numbers = #tpu.dot_dimension_numbers<[1], [0], [0], [1], [0, 0, 1, 1], [], []>} : vector<16x32xbf16>, vector<32x128xbf16>, vector<16x128xf32> -> vector<16x128xf32>
    %c0_33 = arith.constant 0 : index
    %c0_34 = arith.constant 0 : index
    %59 = vector.load %arg11[%c0_33, %c0_34] : memref<1x128xf32, #tpu.memory_space<vmem>>, vector<1x128xf32>
    %60 = vector.broadcast %59 : vector<1x128xf32> to vector<16x128xf32>
    %61 = arith.addf %58, %60 : vector<16x128xf32>
    %62 = arith.mulf %54, %53 : vector<16x32xf32>
    %63 = arith.truncf %62 : vector<16x32xf32> to vector<16x32xbf16>
    %c0_35 = arith.constant 0 : index
    %c0_36 = arith.constant 0 : index
    %64 = vector.load %arg12[%c0_35, %c0_36] : memref<32x128xbf16, #tpu.memory_space<vmem>>, vector<32x128xbf16>
    %cst_37 = arith.constant dense<0.000000e+00> : vector<16x128xf32>
    %65 = tpu.matmul %63, %64, %cst_37 {dimension_numbers = #tpu.dot_dimension_numbers<[1], [0], [0], [1], [0, 0, 1, 1], [], []>} : vector<16x32xbf16>, vector<32x128xbf16>, vector<16x128xf32> -> vector<16x128xf32>
    %c0_38 = arith.constant 0 : index
    %c0_39 = arith.constant 0 : index
    %66 = vector.load %arg13[%c0_38, %c0_39] : memref<1x128xf32, #tpu.memory_space<vmem>>, vector<1x128xf32>
    %67 = vector.broadcast %66 : vector<1x128xf32> to vector<16x128xf32>
    %68 = arith.addf %65, %67 : vector<16x128xf32>
    %cst_40 = arith.constant 0.000000e+00 : f32
    %69 = vector.broadcast %cst_40 : f32 to vector<16x128xf32>
    %70 = arith.cmpf ogt, %61, %69 : vector<16x128xf32>
    %cst_41 = arith.constant 2.000000e-01 : f32
    %71 = vector.broadcast %cst_41 : f32 to vector<16x128xf32>
    %72 = arith.mulf %71, %61 : vector<16x128xf32>
    %73 = arith.select %70, %61, %72 : vector<16x128xi1>, vector<16x128xf32>
    %cst_42 = arith.constant 0.000000e+00 : f32
    %74 = vector.broadcast %cst_42 : f32 to vector<16x128xf32>
    %75 = arith.cmpf ogt, %68, %74 : vector<16x128xf32>
    %cst_43 = arith.constant 2.000000e-01 : f32
    %76 = vector.broadcast %cst_43 : f32 to vector<16x128xf32>
    %77 = arith.mulf %76, %68 : vector<16x128xf32>
    %78 = arith.select %75, %68, %77 : vector<16x128xi1>, vector<16x128xf32>
    %79 = arith.addf %73, %78 : vector<16x128xf32>
    %c0_44 = arith.constant 0 : index
    %c0_45 = arith.constant 0 : index
    %80 = vector.load %arg14[%c0_44, %c0_45] : memref<16x128xf32, #tpu.memory_space<vmem>>, vector<16x128xf32>
    tpu.vector_store %arg14[%c0_44, %c0_45], %79 {strides = array<i32>} : memref<16x128xf32, #tpu.memory_space<vmem>>, vector<16x128xf32>,
    return
  }
  func.func @transform_0(%arg0: i32) -> (i32, i32) {
    %c0_i32 = arith.constant 0 : i32
    %c0_i32_0 = arith.constant 0 : i32
    return %arg0, %c0_i32 : i32, i32
  }
  func.func @transform_1(%arg0: i32) -> (i32, i32, i32) {
    %c0_i32 = arith.constant 0 : i32
    %c0_i32_0 = arith.constant 0 : i32
    %c0_i32_1 = arith.constant 0 : i32
    return %c0_i32, %arg0, %c0_i32_0 : i32, i32, i32
  }
  func.func @transform_2(%arg0: i32) -> (i32, i32, i32) {
    %c0_i32 = arith.constant 0 : i32
    %c0_i32_0 = arith.constant 0 : i32
    %c0_i32_1 = arith.constant 0 : i32
    return %c0_i32, %arg0, %c0_i32_0 : i32, i32, i32
  }
  func.func @transform_3(%arg0: i32) -> (i32, i32) {
    %c0_i32 = arith.constant 0 : i32
    %c0_i32_0 = arith.constant 0 : i32
    %c0_i32_1 = arith.constant 0 : i32
    return %c0_i32, %c0_i32_0 : i32, i32
  }
  func.func @transform_4(%arg0: i32) -> (i32, i32) {
    %c0_i32 = arith.constant 0 : i32
    %c0_i32_0 = arith.constant 0 : i32
    %c0_i32_1 = arith.constant 0 : i32
    return %c0_i32, %c0_i32_0 : i32, i32
  }
  func.func @transform_5(%arg0: i32) -> (i32, i32) {
    %c0_i32 = arith.constant 0 : i32
    %c0_i32_0 = arith.constant 0 : i32
    %c0_i32_1 = arith.constant 0 : i32
    return %c0_i32, %c0_i32_0 : i32, i32
  }
  func.func @transform_6(%arg0: i32) -> (i32, i32) {
    %c0_i32 = arith.constant 0 : i32
    %c0_i32_0 = arith.constant 0 : i32
    %c0_i32_1 = arith.constant 0 : i32
    return %c0_i32, %c0_i32_0 : i32, i32
  }
  func.func @transform_7(%arg0: i32) -> (i32, i32) {
    %c0_i32 = arith.constant 0 : i32
    %c0_i32_0 = arith.constant 0 : i32
    %c0_i32_1 = arith.constant 0 : i32
    return %c0_i32, %c0_i32_0 : i32, i32
  }
  func.func @transform_8(%arg0: i32) -> (i32, i32) {
    %c0_i32 = arith.constant 0 : i32
    %c0_i32_0 = arith.constant 0 : i32
    %c0_i32_1 = arith.constant 0 : i32
    return %c0_i32, %c0_i32_0 : i32, i32
  }
  func.func @transform_9(%arg0: i32) -> (i32, i32) {
    %c0_i32 = arith.constant 0 : i32
    %c0_i32_0 = arith.constant 0 : i32
    %c0_i32_1 = arith.constant 0 : i32
    return %c0_i32, %c0_i32_0 : i32, i32
  }
  func.func @transform_10(%arg0: i32) -> (i32, i32) {
    %c0_i32 = arith.constant 0 : i32
    %c0_i32_0 = arith.constant 0 : i32
    %c0_i32_1 = arith.constant 0 : i32
    return %c0_i32, %c0_i32_0 : i32, i32
  }
  func.func @transform_11(%arg0: i32) -> (i32, i32) {
    %c0_i32 = arith.constant 0 : i32
    %c0_i32_0 = arith.constant 0 : i32
    %c0_i32_1 = arith.constant 0 : i32
    return %c0_i32, %c0_i32_0 : i32, i32
  }
  func.func @transform_12(%arg0: i32) -> (i32, i32) {
    %c0_i32 = arith.constant 0 : i32
    %c0_i32_0 = arith.constant 0 : i32
    %c0_i32_1 = arith.constant 0 : i32
    return %c0_i32, %c0_i32_0 : i32, i32
  }
  func.func @transform_13(%arg0: i32) -> (i32, i32) {
    %c0_i32 = arith.constant 0 : i32
    %c0_i32_0 = arith.constant 0 : i32
    return %arg0, %c0_i32 : i32, i32
  }
}

</mosaic_0001>

<bundles_post_ra>
// kernel: kg_forward.2
= control target key start
LH: loop header
LB: loop body
LE: loop exit
PB: predicated region body
PF: predicated region fallthrough
CT: control target
= control target key end

     0   :  { %v925_v0 = vmov 0.0   ;;  %vm926_vm0 = vmmov 0   ;;  %vm62_vm1 = vcmask 130048   ;;  %s927_s24 = smov 16   ;;  %vm592_vm4 = vcmask 261120   ;;  %s1122_s3 = inlined_call_operand.vmem [shape: bf16[16,16], index: 3, kind: input, shape index: {}]   ;;  %s1123_s4 = inlined_call_operand.vmem [shape: bf16[16,16], index: 4, kind: input, shape index: {}]   ;;  %s1124_s0 = inlined_call_operand.vmem [shape: bf16[16,16], index: 0, kind: input, shape index: {}]   ;;  %s1125_s1 = inlined_call_operand.vmem [shape: bf16[4,16,16], index: 1, kind: input, shape index: {}]   ;;  %s1126_s5 = inlined_call_operand.vmem [shape: bf16[16,16], index: 5, kind: input, shape index: {}]   ;;  %s1127_s6 = inlined_call_operand.vmem [shape: f32[1,16], index: 6, kind: input, shape index: {}]   ;;  %s1128_s7 = inlined_call_operand.vmem [shape: bf16[16,32], index: 7, kind: input, shape index: {}]   ;;  %s1129_s9 = inlined_call_operand.vmem [shape: bf16[32,128], index: 9, kind: input, shape index: {}]   ;;  %s1130_s2 = inlined_call_operand.vmem [shape: bf16[4,16,16], index: 2, kind: input, shape index: {}]   ;;  %s1131_s11 = inlined_call_operand.vmem [shape: bf16[32,128], index: 11, kind: input, shape index: {}]   ;;  %s1132_s8 = inlined_call_operand.vmem [shape: f32[1,32], index: 8, kind: input, shape index: {}]   ;;  %s1133_s10 = inlined_call_operand.vmem [shape: f32[1,128], index: 10, kind: input, shape index: {}]   ;;  %s1134_s12 = inlined_call_operand.vmem [shape: f32[1,128], index: 12, kind: input, shape index: {}]   ;;  %s1135_s13 = inlined_call_operand.vmem [shape: f32[16,128], index: 13, kind: output, shape index: {}]  }
   0x1   :  { %803 = vmatprep.subr.bf16.mxu0 %v925_v0  ;;  %v859_v1 = vld [vmem:[%s1122_s3] sm:$0xff]   ;;  %805 = vmatprep.mubr.msk.bf16.mxu0 %vm926_vm0, %v925_v0  ;;  %v863_v5 = vld [vmem:[%s1125_s1 + $0x8] sm:$0xff]   ;;  %v864_v6 = vld [vmem:[%s1125_s1 + $0x10] sm:$0xff]  }
   0x2   :  { %v860_v2 = vld [vmem:[%s1123_s4] sm:$0xff]   ;;  %804 = vmatpush3.bf16.msra.mxu0 %v859_v1  ;;  %v865_v7 = vld [vmem:[%s1125_s1 + $0x18] sm:$0xff]  }
   0x3   :  { %v1010_v3 = vld [vmem:[%s1124_s0] sm:$0xff]   ;;  %809 = vmatprep.subr.bf16.mxu1 %v860_v2 }
   0x4   :  { %v862_v4 = vld [vmem:[%s1125_s1] sm:$0xff]   ;;  %810 = vmatpush3.bf16.msra.mxu1 %v860_v2 }
   0x5   :  { %806 = vmatmul.mubr.msk.bf16.vlgmr.msra.gmra.mrb[0].mxu0 %vm62_vm1, %v1010_v3  ;;  %811 = vmatprep.mubr.msk.bf16.mxu1 %vm62_vm1, %v862_v4  ;;  %v866_v8 = vld [vmem:[%s1126_s5] sm:$0xff]  }
   0x6   :  { %829 = vmatprep.subr.bf16.mxu1 %v925_v0  ;;  %819 = vmatprep.subr.bf16.mxu0 %v866_v8  ;;  %v744_v42 = vld [vmem:[%s1127_s6] ss:$0 sm:$0xff] }
   0x7   :  { %812 = vmatmul.mubr.msk.bf16.vlgmr.msra.gmra.mrb[0].mxu1 %vm62_vm1, %v863_v5  ;;  %820 = vmatpush3.bf16.msra.mxu0 %v866_v8 }
   0x8   :  { %815 = vmatprep.mubr.msk.bf16.mxu1 %vm62_vm1, %v864_v6  ;;  %835 = vmatprep.subr.bf16.mxu0 %v925_v0 }
   0xf   :  { %816 = vmatmul.mubr.msk.bf16.gmra.mrb[4].mxu1 %vm62_vm1, %v865_v7 }
  0x10   :  { %831 = vmatprep.mubr.msk.bf16.mxu1 %vm926_vm0, %v925_v0 }
  0xd8   :  { %v100_v9 = vpop.f32.mrb[0].mxu0 }
  0xd9   :  { %v807_v10 = vpop.f32.mrb[1].mxu0 }
  0xda   :  { %v813_v11 = vpop.f32.mrb[0].mxu1  ;;  %v103_v12 = vpop.f32.mrb[2].mxu0 }
  0xdb   :  { %v222_v13 = vadd.f32 %v813_v11, %v100_v9  ;;  %v189_v14 = vpop.f32.mrb[1].mxu1  ;;  %v808_v15 = vpop.f32.mrb[3].mxu0 }
  0xdc   :  { %v220_v16 = vadd.f32 %v189_v14, %v100_v9  ;;  %v814_v17 = vpop.f32.mrb[2].mxu1  ;;  %v48_v14 = vunpack.c.h.bf16 %v1010_v3  ;;  %v868_v15 = vld [vmem:[%s1129_s9] sm:$0xff]  }
  0xdd   :  { %v223_v18 = vadd.f32 %v814_v17, %v103_v12  ;;  %v192_v19 = vpop.f32.mrb[3].mxu1  ;;  %v230_v21 = vmax.f32 %v222_v13, 0.0  ;;  %v47_v13 = vunpack.c.l.bf16 %v1010_v3  ;;  %v760_v3 = vld [vmem:[%s1134_s12] ss:$0 sm:$0xff] }
  0xde   :  { %v221_v20 = vadd.f32 %v192_v19, %v103_v12  ;;  %v228_v23 = vmax.f32 %v220_v16, 0.0 }
  0xdf   :  { %v231_v22 = vmax.f32 %v223_v18, 0.0  ;;  %v854_v16 = vpack.i.bf16 %v48_v14, %v47_v13 }
  0xe0   :  { %v229_v24 = vmax.f32 %v221_v20, 0.0 }
  0xe1   :  { %v237_v25 = vpack.c.bf16 %v231_v22, %v230_v21 }
  0xe2   :  { %v236_v26 = vpack.c.bf16 %v229_v24, %v228_v23  ;;  %v817_v27 = vpop.f32.mrb[4].mxu1 }
  0xe3   :  { %v226_v28 = vadd.f32 %v817_v27, %v100_v9  ;;  %v205_v29 = vpop.f32.mrb[5].mxu1 }
  0xe4   :  { %v224_v30 = vadd.f32 %v205_v29, %v100_v9  ;;  %v818_v31 = vpop.f32.mrb[6].mxu1  ;;  %821 = vmatprep.mubr.msk.bf16.mxu0 %vm62_vm1, %v236_v26 }
  0xe5   :  { %v227_v32 = vadd.f32 %v818_v31, %v103_v12  ;;  %v208_v33 = vpop.f32.mrb[7].mxu1  ;;  %822 = vmatmul.mubr.msk.bf16.vlgmr.msra.gmra.mrb[4].mxu0 %vm62_vm1, %v237_v25  ;;  %v234_v35 = vmax.f32 %v226_v28, 0.0 }
  0xe6   :  { %v225_v34 = vadd.f32 %v208_v33, %v103_v12  ;;  %v232_v37 = vmax.f32 %v224_v30, 0.0  ;;  %v867_v12 = vld [vmem:[%s1128_s7] sm:$0xff]   ;;  %836 = vmatpush3.bf16.msra.mxu0 %v868_v15 }
  0xe7   :  { %v235_v36 = vmax.f32 %v227_v32, 0.0  ;;  %830 = vmatpush3.bf16.msra.mxu1 %v867_v12  ;;  %837 = vmatprep.subr.bf16.mxu0 %v925_v0 }
  0xe8   :  { %v233_v38 = vmax.f32 %v225_v34, 0.0  ;;  %843 = vmatprep.subr.bf16.mxu1 %v925_v0 }
  0xe9   :  { %v239_v39 = vpack.c.bf16 %v235_v36, %v234_v35 }
  0xea   :  { %v238_v40 = vpack.c.bf16 %v233_v38, %v232_v37 }
  0xec   :  { %825 = vmatprep.mubr.msk.bf16.mxu0 %vm62_vm1, %v238_v40 }
  0xed   :  { %826 = vmatmul.mubr.msk.bf16.gmra.mrb[8].mxu0 %vm62_vm1, %v239_v39 }
  0xee   :  { %839 = vmatprep.mubr.msk.bf16.mxu0 %vm926_vm0, %v925_v0 }
 0x1b8   :  { %v823_v41 = vpop.f32.mrb[4].mxu0 }
 0x1b9   :  { %v327_v43 = vmax.f32 %v823_v41, 0.0  ;;  %v294_v44 = vpop.f32.mrb[5].mxu0 }
 0x1ba   :  { %v325_v45 = vmax.f32 %v294_v44, 0.0  ;;  %v824_v46 = vpop.f32.mrb[6].mxu0 }
 0x1bb   :  { %v328_v47 = vmax.f32 %v824_v46, 0.0  ;;  %v297_v48 = vpop.f32.mrb[7].mxu0  ;;  %v342_v49 = vmul.f32 %v744_v42, %v327_v43 }
 0x1bc   :  { %v326_v50 = vmax.f32 %v297_v48, 0.0  ;;  %v340_v51 = vmul.f32 %v744_v42, %v325_v45 }
 0x1bd   :  { %v354_v52 = vsel %vm62_vm1, %v342_v49, 0.0  ;;  %v343_v53 = vmul.f32 %v744_v42, %v328_v47 }
 0x1be   :  { %355 = vadd.xlane.f32.xlu1 %v354_v52  ;;  %v348_v54 = vsel %vm62_vm1, %v340_v51, 0.0  ;;  %v341_v55 = vmul.f32 %v744_v42, %v326_v50 }
 0x1bf   :  { %349 = vadd.xlane.f32.xlu0 %v348_v54  ;;  %v357_v58 = vsel %vm62_vm1, %v343_v53, 0.0 }
 0x1c0   :  { %v827_v56 = vpop.f32.mrb[8].mxu0  ;;  %v351_v62 = vsel %vm62_vm1, %v341_v55, 0.0 }
 0x1c1   :  { %v310_v57 = vpop.f32.mrb[9].mxu0  ;;  %v331_v59 = vmax.f32 %v827_v56, 0.0 }
 0x1c2   :  { %v329_v60 = vmax.f32 %v310_v57, 0.0  ;;  %358 = vadd.xlane.f32.xlu1 %v357_v58  ;;  %v828_v61 = vpop.f32.mrb[10].mxu0 }
 0x1c3   :  { %352 = vadd.xlane.f32.xlu0 %v351_v62  ;;  %v313_v63 = vpop.f32.mrb[11].mxu0  ;;  %v332_v1 = vmax.f32 %v828_v61, 0.0  ;;  %v346_v7 = vmul.f32 %v744_v42, %v331_v59 }
 0x1c4   :  { %v330_v2 = vmax.f32 %v313_v63, 0.0  ;;  %v344_v4 = vmul.f32 %v744_v42, %v329_v60 }
 0x1c5   :  { %v347_v9 = vmul.f32 %v744_v42, %v332_v1  ;;  %v366_v10 = vsel %vm62_vm1, %v346_v7, 0.0 }
 0x1c6   :  { %v360_v5 = vsel %vm62_vm1, %v344_v4, 0.0  ;;  %v345_v6 = vmul.f32 %v744_v42, %v330_v2 }
 0x1c7   :  { %361 = vadd.xlane.f32.xlu0 %v360_v5  ;;  %v369_v11 = vsel %vm62_vm1, %v347_v9, 0.0 }
 0x1c8   :  { %v363_v8 = vsel %vm62_vm1, %v345_v6, 0.0 }
 0x1c9   :  { %364 = vadd.xlane.f32.xlu1 %v363_v8 }
 0x1cb   :  { %367 = vadd.xlane.f32.xlu0 %v366_v10 }
 0x1cd   :  { %370 = vadd.xlane.f32.xlu1 %v369_v11 }
 0x1e1   :  { %855 = vrot.lane.b32.xlu0 %v854_v16, %s927_s24 }
 0x24b   :  { %v356_v17 = vpop.xlane.xlu1 %355 }
 0x24c   :  { %v747_v18 = vmul.f32 -1.442695, %v356_v17  ;;  %v350_v19 = vpop.xlane.xlu0 %349 }
 0x24d   :  { %v745_v20 = vmul.f32 -1.442695, %v350_v19  ;;  %v782_v19 = vld [vmem:[%s1130_s2 + $0x18] sm:$0xff]  }
 0x24e   :  { %873 = vpow2.f32 %v747_v18 }
 0x24f   :  { %875 = vpow2.f32 %v745_v20  ;;  %v359_v21 = vpop.xlane.xlu1 %358  ;;  %v765_v20 = vld [vmem:[%s1130_s2] sm:$0xff]  }
 0x250   :  { %v748_v22 = vmul.f32 -1.442695, %v359_v21  ;;  %v353_v23 = vpop.xlane.xlu0 %352  ;;  %v780_v21 = vld [vmem:[%s1130_s2 + $0x8] sm:$0xff]  }
 0x251   :  { %v746_v24 = vmul.f32 -1.442695, %v353_v23  ;;  %v778_v23 = vunpack.c.l.bf16 %v782_v19 }
 0x252   :  { %877 = vpow2.f32 %v748_v22  ;;  %v781_v22 = vld [vmem:[%s1130_s2 + $0x10] sm:$0xff]  }
 0x253   :  { %879 = vpow2.f32 %v746_v24  ;;  %v766_v24 = vunpack.c.l.bf16 %v765_v20 }
 0x254   :  { %v362_v25 = vpop.xlane.xlu0 %361 }
 0x255   :  { %v749_v26 = vmul.f32 -1.442695, %v362_v25  ;;  %v770_v25 = vunpack.c.l.bf16 %v780_v21 }
 0x256   :  { %v365_v27 = vpop.xlane.xlu1 %364 }
 0x257   :  { %881 = vpow2.f32 %v749_v26  ;;  %v750_v28 = vmul.f32 -1.442695, %v365_v27  ;;  %v774_v26 = vunpack.c.l.bf16 %v781_v22 }
 0x258   :  { %v874_v29 = vpop.eup %873  ;;  %v368_v30 = vpop.xlane.xlu0 %367 }
 0x259   :  { %v876_v31 = vpop.eup %875  ;;  %v398_v32 = vadd.f32 1.0, %v874_v29  ;;  %883 = vpow2.f32 %v750_v28  ;;  %v751_v33 = vmul.f32 -1.442695, %v368_v30  ;;  %v779_v28 = vunpack.c.h.bf16 %v782_v19 }
 0x25a   :  { %v371_v34 = vpop.xlane.xlu1 %370  ;;  %v396_v35 = vadd.f32 1.0, %v876_v31  ;;  %v767_v29 = vunpack.c.h.bf16 %v765_v20  ;;  %v771_v30 = vunpack.c.h.bf16 %v780_v21  ;;  %v775_v31 = vunpack.c.h.bf16 %v781_v22 }
 0x25b   :  { %v752_v36 = vmul.f32 -1.442695, %v371_v34  ;;  %885 = vrcp.f32 %v398_v32 }
 0x25c   :  { %v878_v37 = vpop.eup %877  ;;  %887 = vpow2.f32 %v751_v33 }
 0x25d   :  { %v880_v38 = vpop.eup %879  ;;  %v399_v39 = vadd.f32 1.0, %v878_v37  ;;  %889 = vpow2.f32 %v752_v36 }
 0x25e   :  { %v397_v40 = vadd.f32 1.0, %v880_v38  ;;  %891 = vrcp.f32 %v396_v35 }
 0x25f   :  { %893 = vrcp.f32 %v399_v39 }
 0x260   :  { %895 = vrcp.f32 %v397_v40 }
 0x261   :  { %v882_v41 = vpop.eup %881 }
 0x262   :  { %v400_v42 = vadd.f32 1.0, %v882_v41 }
 0x263   :  { %v884_v43 = vpop.eup %883 }
 0x264   :  { %897 = vrcp.f32 %v400_v42  ;;  %v401_v44 = vadd.f32 1.0, %v884_v43 }
 0x265   :  { %v886_v45 = vpop.eup %885 }
 0x266   :  { %899 = vrcp.f32 %v401_v44  ;;  %v888_v46 = vpop.eup %887  ;;  %v424_v53 = vmul.f32 1.442695, %v886_v45 }
 0x267   :  { %v890_v47 = vpop.eup %889  ;;  %v402_v48 = vadd.f32 1.0, %v888_v46 }
 0x268   :  { %v892_v49 = vpop.eup %891  ;;  %v403_v50 = vadd.f32 1.0, %v890_v47 }
 0x269   :  { %v894_v51 = vpop.eup %893  ;;  %901 = vrcp.f32 %v402_v48  ;;  %v420_v54 = vmul.f32 1.442695, %v892_v49 }
 0x26a   :  { %v896_v52 = vpop.eup %895  ;;  %903 = vrcp.f32 %v403_v50  ;;  %v426_v55 = vmul.f32 1.442695, %v894_v51 }
 0x26b   :  { %v422_v57 = vmul.f32 1.442695, %v896_v52  ;;  %905 = vpow2.f32 %v424_v53 }
 0x26c   :  { %907 = vpow2.f32 %v420_v54 }
 0x26d   :  { %909 = vpow2.f32 %v426_v55 }
 0x26e   :  { %v898_v56 = vpop.eup %897  ;;  %911 = vpow2.f32 %v422_v57 }
 0x26f   :  { %v428_v58 = vmul.f32 1.442695, %v898_v56 }
 0x270   :  { %v900_v59 = vpop.eup %899 }
 0x271   :  { %v430_v60 = vmul.f32 1.442695, %v900_v59  ;;  %913 = vpow2.f32 %v428_v58 }
 0x273   :  { %v902_v61 = vpop.eup %901  ;;  %915 = vpow2.f32 %v430_v60 }
 0x274   :  { %v904_v62 = vpop.eup %903  ;;  %v432_v63 = vmul.f32 1.442695, %v902_v61 }
 0x275   :  { %v434_v1 = vmul.f32 1.442695, %v904_v62  ;;  %v906_v2 = vpop.eup %905 }
 0x276   :  { %917 = vpow2.f32 %v432_v63  ;;  %v908_v4 = vpop.eup %907 }
 0x277   :  { %919 = vpow2.f32 %v434_v1  ;;  %v910_v5 = vpop.eup %909  ;;  %v436_v9 = vadd.f32 %v908_v4, %v906_v2  ;;  %v870_v1 = vld [vmem:[%s1131_s11] sm:$0xff]  }
 0x278   :  { %v912_v6 = vpop.eup %911 }
 0x279   :  { %v439_v10 = vadd.f32 %v912_v6, %v910_v5 }
 0x27b   :  { %v914_v7 = vpop.eup %913 }
 0x27c   :  { %v437_v11 = vadd.f32 %v914_v7, %v436_v9 }
 0x27d   :  { %v916_v8 = vpop.eup %915 }
 0x27e   :  { %v440_v15 = vadd.f32 %v916_v8, %v439_v10 }
 0x280   :  { %v918_v12 = vpop.eup %917 }
 0x281   :  { %v920_v16 = vpop.eup %919  ;;  %v438_v17 = vadd.f32 %v918_v12, %v437_v11 }
 0x282   :  { %v441_v18 = vadd.f32 %v920_v16, %v440_v15 }
 0x283   :  { %921 = vrcp.f32 %v438_v17 }
 0x284   :  { %923 = vrcp.f32 %v441_v18 }
 0x28d   :  { %v922_v27 = vpop.eup %921 }
 0x28e   :  { %v924_v32 = vpop.eup %923  ;;  %v450_v33 = vmul.f32 %v922_v27, %v918_v12  ;;  %v444_v34 = vmul.f32 %v922_v27, %v908_v4  ;;  %v446_v35 = vmul.f32 %v922_v27, %v906_v2  ;;  %v448_v36 = vmul.f32 %v922_v27, %v914_v7  ;;  %v869_v2 = vld [vmem:[%s1129_s9 + $0x8] sm:$0xff]  }
 0x28f   :  { %v451_v37 = vmul.f32 %v924_v32, %v920_v16  ;;  %v445_v38 = vmul.f32 %v924_v32, %v912_v6  ;;  %v447_v39 = vmul.f32 %v924_v32, %v910_v5  ;;  %v449_v40 = vmul.f32 %v924_v32, %v916_v8  ;;  %v871_v4 = vld [vmem:[%s1131_s11 + $0x8] sm:$0xff]   ;;  %838 = vmatpush3.bf16.msra.mxu0 %v869_v2  ;;  %v856_v5 = vpop.permute.xlu0 %855  ;;  %v753_v6 = vld [vmem:[%s1132_s8] ss:$0 sm:$0xff] }
 0x290   :  { %v468_v41 = vmul.f32 %v766_v24, %v444_v34  ;;  %v470_v42 = vmul.f32 %v770_v25, %v446_v35  ;;  %v472_v43 = vmul.f32 %v774_v26, %v448_v36  ;;  %v474_v47 = vmul.f32 %v778_v23, %v450_v33 }
 0x291   :  { %v469_v44 = vmul.f32 %v767_v29, %v445_v38  ;;  %v471_v45 = vmul.f32 %v771_v30, %v447_v39  ;;  %v473_v46 = vmul.f32 %v775_v31, %v449_v40  ;;  %v475_v50 = vmul.f32 %v779_v28, %v451_v37 }
 0x292   :  { %v476_v48 = vsel %vm62_vm1, %v468_v41, 0.0  ;;  %v477_v49 = vsel %vm62_vm1, %v470_v42, 0.0  ;;  %v479_v54 = vsel %vm62_vm1, %v472_v43, 0.0  ;;  %v481_v59 = vsel %vm62_vm1, %v474_v47, 0.0 }
 0x293   :  { %v478_v51 = vadd.f32 %v477_v49, %v476_v48  ;;  %v483_v52 = vsel %vm62_vm1, %v469_v44, 0.0  ;;  %v484_v53 = vsel %vm62_vm1, %v471_v45, 0.0  ;;  %v486_v57 = vsel %vm62_vm1, %v473_v46, 0.0 }
 0x294   :  { %v485_v55 = vadd.f32 %v484_v53, %v483_v52  ;;  %v488_v60 = vsel %vm62_vm1, %v475_v50, 0.0  ;;  %v857_v8 = vunpack.i.l.bf16 %v856_v5 }
 0x295   :  { %v480_v56 = vadd.f32 %v479_v54, %v478_v51 }
 0x296   :  { %v487_v58 = vadd.f32 %v486_v57, %v485_v55  ;;  %v564_v17 = vsel %vm62_vm1, %v47_v13, %v857_v8  ;;  %v756_v13 = vld [vmem:[%s1133_s10] ss:$0 sm:$0xff] }
 0x297   :  { %v482_v61 = vadd.f32 %v481_v59, %v480_v56 }
 0x298   :  { %v489_v62 = vadd.f32 %v488_v60, %v487_v58 }
 0x29a   :  { %v490_v63 = vpack.c.bf16 %v489_v62, %v482_v61 }
 0x29c   :  { %832 = vmatmul.mubr.msk.bf16.vlgmr.msra.gmra.mrb[8].mxu1 %vm62_vm1, %v490_v63 }
 0x29d   :  { %847 = vmatprep.mubr.msk.bf16.mxu1 %vm926_vm0, %v925_v0  ;;  %844 = vmatpush3.bf16.msra.mxu1 %v870_v1 }
 0x29e   :  { %845 = vmatprep.subr.bf16.mxu1 %v925_v0  ;;  %v858_v0 = vunpack.i.h.bf16 %v856_v5 }
 0x2a0   :  { %v565_v20 = vsel %vm62_vm1, %v48_v14, %v858_v0 }
 0x2a1   :  { %846 = vmatpush3.bf16.msra.mxu1 %v871_v4 }
 0x36f   :  { %v543_v7 = vpop.f32.mrb[8].mxu1 }
 0x370   :  { %v544_v9 = vadd.f32 %v753_v6, %v543_v7  ;;  %v833_v10 = vpop.f32.mrb[9].mxu1 }
 0x371   :  { %v546_v11 = vpop.f32.mrb[10].mxu1 }
 0x372   :  { %vm550_vm2 = vcmp.gt.f32.partialorder %v544_v9, 0.0  ;;  %v552_v12 = vmul.f32 0.2, %v544_v9  ;;  %v547_v15 = vadd.f32 %v753_v6, %v546_v11  ;;  %v834_v16 = vpop.f32.mrb[11].mxu1 }
 0x374   :  { %v554_v18 = vsel %vm550_vm2, %v544_v9, %v552_v12  ;;  %vm551_vm3 = vcmp.gt.f32.partialorder %v547_v15, 0.0  ;;  %v553_v19 = vmul.f32 0.2, %v547_v15 }
 0x375   :  { %v566_v24 = vadd.f32 %v564_v17, %v554_v18  ;;  %v637_v25 = vmul.f32 %v564_v17, %v554_v18 }
 0x376   :  { %v555_v21 = vsel %vm551_vm3, %v547_v15, %v553_v19 }
 0x377   :  { %v567_v22 = vadd.f32 %v565_v20, %v555_v21  ;;  %v638_v23 = vmul.f32 %v565_v20, %v555_v21 }
 0x379   :  { %v568_v26 = vpack.c.bf16 %v567_v22, %v566_v24  ;;  %v639_v27 = vpack.c.bf16 %v638_v23, %v637_v25 }
 0x37b   :  { %840 = vmatmul.mubr.msk.bf16.vlgmr.msra.gmra.mrb[12].mxu0 %vm592_vm4, %v568_v26  ;;  %848 = vmatmul.mubr.msk.bf16.vlgmr.msra.gmra.mrb[12].mxu1 %vm592_vm4, %v639_v27 }
 0x44e   :  { %v630_v28 = vpop.f32.mrb[12].mxu0  ;;  %v700_v14 = vpop.f32.mrb[12].mxu1 }
 0x44f   :  { %v631_v29 = vadd.f32 %v756_v13, %v630_v28  ;;  %v701_v30 = vadd.f32 %v760_v3, %v700_v14  ;;  %v841_v31 = vpop.f32.mrb[13].mxu0  ;;  %v849_v32 = vpop.f32.mrb[13].mxu1 }
 0x450   :  { %v633_v33 = vpop.f32.mrb[14].mxu0  ;;  %v703_v34 = vpop.f32.mrb[14].mxu1 }
 0x451   :  { %vm707_vm5 = vcmp.gt.f32.partialorder %v631_v29, 0.0  ;;  %v709_v35 = vmul.f32 0.2, %v631_v29  ;;  %vm713_vm6 = vcmp.gt.f32.partialorder %v701_v30, 0.0  ;;  %v715_v36 = vmul.f32 0.2, %v701_v30 }
 0x452   :  { %v634_v37 = vadd.f32 %v756_v13, %v633_v33  ;;  %v704_v38 = vadd.f32 %v760_v3, %v703_v34  ;;  %v842_v39 = vpop.f32.mrb[15].mxu0  ;;  %v850_v40 = vpop.f32.mrb[15].mxu1 }
 0x453   :  { %v711_v41 = vsel %vm707_vm5, %v631_v29, %v709_v35  ;;  %v717_v42 = vsel %vm713_vm6, %v701_v30, %v715_v36 }
 0x454   :  { %v719_v43 = vadd.f32 %v717_v42, %v711_v41  ;;  %vm708_vm7 = vcmp.gt.f32.partialorder %v634_v37, 0.0  ;;  %v710_v44 = vmul.f32 0.2, %v634_v37  ;;  %vm714_vm8 = vcmp.gt.f32.partialorder %v704_v38, 0.0 }
 0x455   :  { %v716_v45 = vmul.f32 0.2, %v704_v38 }
 0x456   :  { %721 = vst [vmem:[%s1135_s13] sm:$0xff] %v719_v43  ;;  %v712_v46 = vsel %vm708_vm7, %v634_v37, %v710_v44 }
 0x457   :  { %v718_v47 = vsel %vm714_vm8, %v704_v38, %v716_v45 }
 0x458   :  { %v720_v48 = vadd.f32 %v718_v47, %v712_v46 }
 0x45a   :  { %722 = vst [vmem:[%s1135_s13 + $0x8] sm:$0xff] %v720_v48 }

// kernel: kg_forward.3
= control target key start
LH: loop header
LB: loop body
LE: loop exit
PB: predicated region body
PF: predicated region fallthrough
CT: control target
= control target key end

     0   :  { %v2839_v0 = vmov 0.0   ;;  %vm2163_vm0 = vmmov 0   ;;  %vm62_vm1 = vcmask 130048   ;;  %s2164_s30 = smov 16   ;;  %vm1480_vm4 = vcmask 261120   ;;  %s2823_s3 = inlined_call_operand.vmem [shape: bf16[16,16], index: 3, kind: input, shape index: {}]   ;;  %s2824_s4 = inlined_call_operand.vmem [shape: bf16[16,16], index: 4, kind: input, shape index: {}]   ;;  %s2825_s0 = inlined_call_operand.vmem [shape: bf16[16,16], index: 0, kind: input, shape index: {}]   ;;  %s2826_s1 = inlined_call_operand.vmem [shape: bf16[16,16,16], index: 1, kind: input, shape index: {}]   ;;  %s2827_s5 = inlined_call_operand.vmem [shape: bf16[16,16], index: 5, kind: input, shape index: {}]   ;;  %s2828_s6 = inlined_call_operand.vmem [shape: f32[1,16], index: 6, kind: input, shape index: {}]   ;;  %s2829_s7 = inlined_call_operand.vmem [shape: bf16[16,32], index: 7, kind: input, shape index: {}]   ;;  %s2830_s9 = inlined_call_operand.vmem [shape: bf16[32,128], index: 9, kind: input, shape index: {}]   ;;  %s2831_s2 = inlined_call_operand.vmem [shape: bf16[16,16,16], index: 2, kind: input, shape index: {}]   ;;  %s2832_s11 = inlined_call_operand.vmem [shape: bf16[32,128], index: 11, kind: input, shape index: {}]   ;;  %s2833_s8 = inlined_call_operand.vmem [shape: f32[1,32], index: 8, kind: input, shape index: {}]   ;;  %s2834_s10 = inlined_call_operand.vmem [shape: f32[1,128], index: 10, kind: input, shape index: {}]   ;;  %s2835_s12 = inlined_call_operand.vmem [shape: f32[1,128], index: 12, kind: input, shape index: {}]   ;;  %s2836_s13 = inlined_call_operand.vmem [shape: f32[16,128], index: 13, kind: output, shape index: {}]  }
   0x1   :  { %1835 = vmatprep.subr.bf16.mxu0 %v2839_v0  ;;  %v1939_v1 = vld [vmem:[%s2823_s3] sm:$0xff]   ;;  %1837 = vmatprep.mubr.msk.bf16.mxu0 %vm2163_vm0, %v2839_v0  ;;  %v1943_v5 = vld [vmem:[%s2826_s1 + $0x8] sm:$0xff]   ;;  %v1944_v6 = vld [vmem:[%s2826_s1 + $0x10] sm:$0xff]  }
   0x2   :  { %v1940_v2 = vld [vmem:[%s2824_s4] sm:$0xff]   ;;  %1836 = vmatpush3.bf16.msra.mxu0 %v1939_v1  ;;  %v1945_v7 = vld [vmem:[%s2826_s1 + $0x18] sm:$0xff]   ;;  %v1947_v9 = vld [vmem:[%s2826_s1 + $0x28] sm:$0xff]  }
   0x3   :  { %v45_v3 = vld [vmem:[%s2825_s0] sm:$0xff]   ;;  %1841 = vmatprep.subr.bf16.mxu1 %v1940_v2  ;;  %v1948_v10 = vld [vmem:[%s2826_s1 + $0x30] sm:$0xff]   ;;  %v1949_v11 = vld [vmem:[%s2826_s1 + $0x38] sm:$0xff]  }
   0x4   :  { %v1942_v4 = vld [vmem:[%s2826_s1] sm:$0xff]   ;;  %1842 = vmatpush3.bf16.msra.mxu1 %v1940_v2  ;;  %v1951_v13 = vld [vmem:[%s2826_s1 + $0x48] sm:$0xff]   ;;  %v1952_v14 = vld [vmem:[%s2826_s1 + $0x50] sm:$0xff]  }
   0x5   :  { %1838 = vmatmul.mubr.msk.bf16.vlgmr.msra.gmra.mrb[0].mxu0 %vm62_vm1, %v45_v3  ;;  %1843 = vmatprep.mubr.msk.bf16.mxu1 %vm62_vm1, %v1942_v4  ;;  %v1946_v8 = vld [vmem:[%s2826_s1 + $0x20] sm:$0xff]   ;;  %v1953_v15 = vld [vmem:[%s2826_s1 + $0x58] sm:$0xff]   ;;  %v1955_v17 = vld [vmem:[%s2826_s1 + $0x68] sm:$0xff]  }
   0x6   :  { %1909 = vmatprep.subr.bf16.mxu1 %v2839_v0  ;;  %v1950_v12 = vld [vmem:[%s2826_s1 + $0x40] sm:$0xff]   ;;  %v1956_v18 = vld [vmem:[%s2826_s1 + $0x70] sm:$0xff]   ;;  %v1957_v19 = vld [vmem:[%s2826_s1 + $0x78] sm:$0xff]  }
   0x7   :  { %1844 = vmatmul.mubr.msk.bf16.vlgmr.msra.gmra.mrb[0].mxu1 %vm62_vm1, %v1943_v5  ;;  %v1954_v16 = vld [vmem:[%s2826_s1 + $0x60] sm:$0xff]  }
   0x8   :  { %1847 = vmatprep.mubr.msk.bf16.mxu1 %vm62_vm1, %v1944_v6  ;;  %v1958_v20 = vld [vmem:[%s2827_s5] sm:$0xff]  }
   0x9   :  { %1875 = vmatprep.subr.bf16.mxu0 %v1958_v20 }
   0xa   :  { %1876 = vmatpush3.bf16.msra.mxu0 %v1958_v20 }
   0xb   :  { %1915 = vmatprep.subr.bf16.mxu0 %v2839_v0 }
   0xf   :  { %1848 = vmatmul.mubr.msk.bf16.gmra.mrb[4].mxu1 %vm62_vm1, %v1945_v7 }
  0x10   :  { %1851 = vmatprep.mubr.msk.bf16.mxu1 %vm62_vm1, %v1946_v8 }
  0x17   :  { %1852 = vmatmul.mubr.msk.bf16.gmra.mrb[8].mxu1 %vm62_vm1, %v1947_v9 }
  0x18   :  { %1855 = vmatprep.mubr.msk.bf16.mxu1 %vm62_vm1, %v1948_v10 }
  0x1f   :  { %1856 = vmatmul.mubr.msk.bf16.gmra.mrb[12].mxu1 %vm62_vm1, %v1949_v11 }
  0x20   :  { %1859 = vmatprep.mubr.msk.bf16.mxu1 %vm62_vm1, %v1950_v12 }
  0x27   :  { %1860 = vmatmul.mubr.msk.bf16.gmra.mrb[16].mxu1 %vm62_vm1, %v1951_v13 }
  0x28   :  { %1863 = vmatprep.mubr.msk.bf16.mxu1 %vm62_vm1, %v1952_v14 }
  0x2f   :  { %1864 = vmatmul.mubr.msk.bf16.gmra.mrb[20].mxu1 %vm62_vm1, %v1953_v15 }
  0x30   :  { %1867 = vmatprep.mubr.msk.bf16.mxu1 %vm62_vm1, %v1954_v16 }
  0x37   :  { %1868 = vmatmul.mubr.msk.bf16.gmra.mrb[24].mxu1 %vm62_vm1, %v1955_v17 }
  0x38   :  { %1871 = vmatprep.mubr.msk.bf16.mxu1 %vm62_vm1, %v1956_v18 }
  0x3f   :  { %1872 = vmatmul.mubr.msk.bf16.gmra.mrb[28].mxu1 %vm62_vm1, %v1957_v19 }
  0x40   :  { %1911 = vmatprep.mubr.msk.bf16.mxu1 %vm2163_vm0, %v2839_v0 }
  0xd8   :  { %v2319_v21 = vpop.f32.mrb[0].mxu0 }
  0xd9   :  { %v1839_v22 = vpop.f32.mrb[1].mxu0 }
  0xda   :  { %v1845_v23 = vpop.f32.mrb[0].mxu1  ;;  %v2321_v24 = vpop.f32.mrb[2].mxu0 }
  0xdb   :  { %v438_v25 = vadd.f32 %v1845_v23, %v2319_v21  ;;  %v309_v26 = vpop.f32.mrb[1].mxu1  ;;  %v1840_v27 = vpop.f32.mrb[3].mxu0 }
  0xdc   :  { %v436_v28 = vadd.f32 %v309_v26, %v2319_v21  ;;  %v1846_v29 = vpop.f32.mrb[2].mxu1 }
  0xdd   :  { %v439_v30 = vadd.f32 %v1846_v29, %v2321_v24  ;;  %v312_v31 = vpop.f32.mrb[3].mxu1  ;;  %v470_v33 = vmax.f32 %v438_v25, 0.0 }
  0xde   :  { %v437_v32 = vadd.f32 %v312_v31, %v2321_v24  ;;  %v468_v35 = vmax.f32 %v436_v28, 0.0 }
  0xdf   :  { %v471_v34 = vmax.f32 %v439_v30, 0.0 }
  0xe0   :  { %v469_v36 = vmax.f32 %v437_v32, 0.0 }
  0xe1   :  { %v501_v37 = vpack.c.bf16 %v471_v34, %v470_v33 }
  0xe2   :  { %v500_v38 = vpack.c.bf16 %v469_v36, %v468_v35  ;;  %v1849_v39 = vpop.f32.mrb[4].mxu1 }
  0xe3   :  { %v442_v40 = vadd.f32 %v1849_v39, %v2319_v21  ;;  %v325_v41 = vpop.f32.mrb[5].mxu1 }
  0xe4   :  { %v440_v42 = vadd.f32 %v325_v41, %v2319_v21  ;;  %v1850_v43 = vpop.f32.mrb[6].mxu1  ;;  %1877 = vmatprep.mubr.msk.bf16.mxu0 %vm62_vm1, %v500_v38 }
  0xe5   :  { %v443_v44 = vadd.f32 %v1850_v43, %v2321_v24  ;;  %v328_v45 = vpop.f32.mrb[7].mxu1  ;;  %1878 = vmatmul.mubr.msk.bf16.vlgmr.msra.gmra.mrb[4].mxu0 %vm62_vm1, %v501_v37  ;;  %v474_v47 = vmax.f32 %v442_v40, 0.0 }
  0xe6   :  { %v441_v46 = vadd.f32 %v328_v45, %v2321_v24  ;;  %v472_v49 = vmax.f32 %v440_v42, 0.0 }
  0xe7   :  { %v475_v48 = vmax.f32 %v443_v44, 0.0 }
  0xe8   :  { %v473_v50 = vmax.f32 %v441_v46, 0.0 }
  0xe9   :  { %v503_v51 = vpack.c.bf16 %v475_v48, %v474_v47 }
  0xea   :  { %v502_v52 = vpack.c.bf16 %v473_v50, %v472_v49  ;;  %v1853_v53 = vpop.f32.mrb[8].mxu1 }
  0xeb   :  { %v446_v54 = vadd.f32 %v1853_v53, %v2319_v21  ;;  %v341_v55 = vpop.f32.mrb[9].mxu1 }
  0xec   :  { %v444_v56 = vadd.f32 %v341_v55, %v2319_v21  ;;  %v1854_v57 = vpop.f32.mrb[10].mxu1  ;;  %1881 = vmatprep.mubr.msk.bf16.mxu0 %vm62_vm1, %v502_v52 }
  0xed   :  { %v447_v58 = vadd.f32 %v1854_v57, %v2321_v24  ;;  %v344_v59 = vpop.f32.mrb[11].mxu1  ;;  %1882 = vmatmul.mubr.msk.bf16.gmra.mrb[8].mxu0 %vm62_vm1, %v503_v51  ;;  %v478_v61 = vmax.f32 %v446_v54, 0.0 }
  0xee   :  { %v445_v60 = vadd.f32 %v344_v59, %v2321_v24  ;;  %v476_v63 = vmax.f32 %v444_v56, 0.0 }
  0xef   :  { %v479_v62 = vmax.f32 %v447_v58, 0.0 }
  0xf0   :  { %v477_v1 = vmax.f32 %v445_v60, 0.0 }
  0xf1   :  { %v505_v2 = vpack.c.bf16 %v479_v62, %v478_v61 }
  0xf2   :  { %v504_v3 = vpack.c.bf16 %v477_v1, %v476_v63  ;;  %v1857_v4 = vpop.f32.mrb[12].mxu1 }
  0xf3   :  { %v450_v5 = vadd.f32 %v1857_v4, %v2319_v21  ;;  %v357_v6 = vpop.f32.mrb[13].mxu1 }
  0xf4   :  { %v448_v7 = vadd.f32 %v357_v6, %v2319_v21  ;;  %v1858_v8 = vpop.f32.mrb[14].mxu1  ;;  %1885 = vmatprep.mubr.msk.bf16.mxu0 %vm62_vm1, %v504_v3 }
  0xf5   :  { %v451_v9 = vadd.f32 %v1858_v8, %v2321_v24  ;;  %v360_v10 = vpop.f32.mrb[15].mxu1  ;;  %1886 = vmatmul.mubr.msk.bf16.gmra.mrb[12].mxu0 %vm62_vm1, %v505_v2  ;;  %v482_v12 = vmax.f32 %v450_v5, 0.0 }
  0xf6   :  { %v449_v11 = vadd.f32 %v360_v10, %v2321_v24  ;;  %v480_v14 = vmax.f32 %v448_v7, 0.0 }
  0xf7   :  { %v483_v13 = vmax.f32 %v451_v9, 0.0 }
  0xf8   :  { %v481_v15 = vmax.f32 %v449_v11, 0.0 }
  0xf9   :  { %v507_v16 = vpack.c.bf16 %v483_v13, %v482_v12  ;;  %v2376_v13 = vld [vmem:[%s2828_s6] ss:$0 sm:$0xff] }
  0xfa   :  { %v506_v17 = vpack.c.bf16 %v481_v15, %v480_v14  ;;  %v1861_v18 = vpop.f32.mrb[16].mxu1 }
  0xfb   :  { %v454_v19 = vadd.f32 %v1861_v18, %v2319_v21  ;;  %v373_v20 = vpop.f32.mrb[17].mxu1 }
  0xfc   :  { %v452_v22 = vadd.f32 %v373_v20, %v2319_v21  ;;  %v1862_v23 = vpop.f32.mrb[18].mxu1  ;;  %1889 = vmatprep.mubr.msk.bf16.mxu0 %vm62_vm1, %v506_v17 }
  0xfd   :  { %v455_v25 = vadd.f32 %v1862_v23, %v2321_v24  ;;  %v376_v26 = vpop.f32.mrb[19].mxu1  ;;  %1890 = vmatmul.mubr.msk.bf16.gmra.mrb[16].mxu0 %vm62_vm1, %v507_v16  ;;  %v486_v28 = vmax.f32 %v454_v19, 0.0 }
  0xfe   :  { %v453_v27 = vadd.f32 %v376_v26, %v2321_v24  ;;  %v484_v30 = vmax.f32 %v452_v22, 0.0 }
  0xff   :  { %v487_v29 = vmax.f32 %v455_v25, 0.0 }
 0x100   :  { %v485_v31 = vmax.f32 %v453_v27, 0.0 }
 0x101   :  { %v509_v32 = vpack.c.bf16 %v487_v29, %v486_v28 }
 0x102   :  { %v508_v33 = vpack.c.bf16 %v485_v31, %v484_v30  ;;  %v1865_v34 = vpop.f32.mrb[20].mxu1 }
 0x103   :  { %v458_v35 = vadd.f32 %v1865_v34, %v2319_v21  ;;  %v389_v36 = vpop.f32.mrb[21].mxu1 }
 0x104   :  { %v456_v37 = vadd.f32 %v389_v36, %v2319_v21  ;;  %v1866_v38 = vpop.f32.mrb[22].mxu1  ;;  %1893 = vmatprep.mubr.msk.bf16.mxu0 %vm62_vm1, %v508_v33 }
 0x105   :  { %v459_v39 = vadd.f32 %v1866_v38, %v2321_v24  ;;  %v392_v40 = vpop.f32.mrb[23].mxu1  ;;  %1894 = vmatmul.mubr.msk.bf16.gmra.mrb[20].mxu0 %vm62_vm1, %v509_v32  ;;  %v490_v42 = vmax.f32 %v458_v35, 0.0 }
 0x106   :  { %v457_v41 = vadd.f32 %v392_v40, %v2321_v24  ;;  %v488_v44 = vmax.f32 %v456_v37, 0.0 }
 0x107   :  { %v491_v43 = vmax.f32 %v459_v39, 0.0 }
 0x108   :  { %v489_v45 = vmax.f32 %v457_v41, 0.0 }
 0x109   :  { %v511_v46 = vpack.c.bf16 %v491_v43, %v490_v42 }
 0x10a   :  { %v510_v47 = vpack.c.bf16 %v489_v45, %v488_v44  ;;  %v1869_v48 = vpop.f32.mrb[24].mxu1 }
 0x10b   :  { %v462_v49 = vadd.f32 %v1869_v48, %v2319_v21  ;;  %v405_v50 = vpop.f32.mrb[25].mxu1 }
 0x10c   :  { %v460_v51 = vadd.f32 %v405_v50, %v2319_v21  ;;  %v1870_v52 = vpop.f32.mrb[26].mxu1  ;;  %1897 = vmatprep.mubr.msk.bf16.mxu0 %vm62_vm1, %v510_v47 }
 0x10d   :  { %v463_v53 = vadd.f32 %v1870_v52, %v2321_v24  ;;  %v408_v54 = vpop.f32.mrb[27].mxu1  ;;  %1898 = vmatmul.mubr.msk.bf16.gmra.mrb[24].mxu0 %vm62_vm1, %v511_v46  ;;  %v494_v56 = vmax.f32 %v462_v49, 0.0 }
 0x10e   :  { %v461_v55 = vadd.f32 %v408_v54, %v2321_v24  ;;  %v492_v58 = vmax.f32 %v460_v51, 0.0 }
 0x10f   :  { %v495_v57 = vmax.f32 %v463_v53, 0.0 }
 0x110   :  { %v493_v59 = vmax.f32 %v461_v55, 0.0 }
 0x111   :  { %v513_v60 = vpack.c.bf16 %v495_v57, %v494_v56 }
 0x112   :  { %v512_v61 = vpack.c.bf16 %v493_v59, %v492_v58  ;;  %v1873_v62 = vpop.f32.mrb[28].mxu1 }
 0x113   :  { %v466_v63 = vadd.f32 %v1873_v62, %v2319_v21  ;;  %v421_v1 = vpop.f32.mrb[29].mxu1 }
 0x114   :  { %v464_v2 = vadd.f32 %v421_v1, %v2319_v21  ;;  %v1874_v3 = vpop.f32.mrb[30].mxu1  ;;  %1901 = vmatprep.mubr.msk.bf16.mxu0 %vm62_vm1, %v512_v61 }
 0x115   :  { %v467_v4 = vadd.f32 %v1874_v3, %v2321_v24  ;;  %v424_v5 = vpop.f32.mrb[31].mxu1  ;;  %1902 = vmatmul.mubr.msk.bf16.gmra.mrb[28].mxu0 %vm62_vm1, %v513_v60  ;;  %v498_v7 = vmax.f32 %v466_v63, 0.0 }
 0x116   :  { %v465_v6 = vadd.f32 %v424_v5, %v2321_v24  ;;  %v496_v9 = vmax.f32 %v464_v2, 0.0 }
 0x117   :  { %v499_v8 = vmax.f32 %v467_v4, 0.0 }
 0x118   :  { %v497_v10 = vmax.f32 %v465_v6, 0.0 }
 0x119   :  { %v515_v11 = vpack.c.bf16 %v499_v8, %v498_v7 }
 0x11a   :  { %v514_v12 = vpack.c.bf16 %v497_v10, %v496_v9 }
 0x11c   :  { %1905 = vmatprep.mubr.msk.bf16.mxu0 %vm62_vm1, %v514_v12 }
 0x11d   :  { %1906 = vmatmul.mubr.msk.bf16.gmra.mrb[32].mxu0 %vm62_vm1, %v515_v11 }
 0x11e   :  { %1919 = vmatprep.mubr.msk.bf16.mxu0 %vm2163_vm0, %v2839_v0 }
 0x1b8   :  { %v1879_v21 = vpop.f32.mrb[4].mxu0 }
 0x1b9   :  { %v735_v24 = vmax.f32 %v1879_v21, 0.0  ;;  %v606_v14 = vpop.f32.mrb[5].mxu0 }
 0x1ba   :  { %v733_v15 = vmax.f32 %v606_v14, 0.0  ;;  %v1880_v16 = vpop.f32.mrb[6].mxu0 }
 0x1bb   :  { %v736_v17 = vmax.f32 %v1880_v16, 0.0  ;;  %v609_v18 = vpop.f32.mrb[7].mxu0  ;;  %v774_v19 = vmul.f32 %v2376_v13, %v735_v24 }
 0x1bc   :  { %v734_v20 = vmax.f32 %v609_v18, 0.0  ;;  %v772_v22 = vmul.f32 %v2376_v13, %v733_v15 }
 0x1bd   :  { %v810_v23 = vsel %vm62_vm1, %v774_v19, 0.0  ;;  %v775_v25 = vmul.f32 %v2376_v13, %v736_v17 }
 0x1be   :  { %811 = vadd.xlane.f32.xlu1 %v810_v23  ;;  %v804_v26 = vsel %vm62_vm1, %v772_v22, 0.0  ;;  %v773_v27 = vmul.f32 %v2376_v13, %v734_v20 }
 0x1bf   :  { %805 = vadd.xlane.f32.xlu0 %v804_v26  ;;  %v813_v31 = vsel %vm62_vm1, %v775_v25, 0.0 }
 0x1c0   :  { %v1883_v28 = vpop.f32.mrb[8].mxu0  ;;  %v807_v34 = vsel %vm62_vm1, %v773_v27, 0.0 }
 0x1c1   :  { %v739_v29 = vmax.f32 %v1883_v28, 0.0  ;;  %v622_v30 = vpop.f32.mrb[9].mxu0 }
 0x1c2   :  { %v737_v32 = vmax.f32 %v622_v30, 0.0  ;;  %814 = vadd.xlane.f32.xlu1 %v813_v31  ;;  %v1884_v33 = vpop.f32.mrb[10].mxu0 }
 0x1c3   :  { %v740_v35 = vmax.f32 %v1884_v33, 0.0  ;;  %808 = vadd.xlane.f32.xlu0 %v807_v34  ;;  %v625_v36 = vpop.f32.mrb[11].mxu0  ;;  %v778_v37 = vmul.f32 %v2376_v13, %v739_v29 }
 0x1c4   :  { %v738_v38 = vmax.f32 %v625_v36, 0.0  ;;  %v776_v41 = vmul.f32 %v2376_v13, %v737_v32 }
 0x1c5   :  { %v822_v39 = vsel %vm62_vm1, %v778_v37, 0.0  ;;  %v779_v40 = vmul.f32 %v2376_v13, %v740_v35 }
 0x1c6   :  { %v777_v43 = vmul.f32 %v2376_v13, %v738_v38  ;;  %v816_v49 = vsel %vm62_vm1, %v776_v41, 0.0 }
 0x1c7   :  { %823 = vadd.xlane.f32.xlu0 %v822_v39  ;;  %v825_v42 = vsel %vm62_vm1, %v779_v40, 0.0 }
 0x1c8   :  { %826 = vadd.xlane.f32.xlu1 %v825_v42  ;;  %v1887_v44 = vpop.f32.mrb[12].mxu0  ;;  %v819_v52 = vsel %vm62_vm1, %v777_v43, 0.0 }
 0x1c9   :  { %v743_v45 = vmax.f32 %v1887_v44, 0.0  ;;  %v638_v46 = vpop.f32.mrb[13].mxu0 }
 0x1ca   :  { %v741_v47 = vmax.f32 %v638_v46, 0.0  ;;  %v1888_v48 = vpop.f32.mrb[14].mxu0 }
 0x1cb   :  { %v744_v50 = vmax.f32 %v1888_v48, 0.0  ;;  %817 = vadd.xlane.f32.xlu0 %v816_v49  ;;  %v641_v51 = vpop.f32.mrb[15].mxu0  ;;  %v782_v53 = vmul.f32 %v2376_v13, %v743_v45 }
 0x1cc   :  { %v742_v54 = vmax.f32 %v641_v51, 0.0  ;;  %820 = vadd.xlane.f32.xlu1 %v819_v52  ;;  %v780_v57 = vmul.f32 %v2376_v13, %v741_v47 }
 0x1cd   :  { %v834_v55 = vsel %vm62_vm1, %v782_v53, 0.0  ;;  %v783_v56 = vmul.f32 %v2376_v13, %v744_v50 }
 0x1ce   :  { %v781_v59 = vmul.f32 %v2376_v13, %v742_v54  ;;  %v828_v2 = vsel %vm62_vm1, %v780_v57, 0.0 }
 0x1cf   :  { %835 = vadd.xlane.f32.xlu0 %v834_v55  ;;  %v837_v58 = vsel %vm62_vm1, %v783_v56, 0.0 }
 0x1d0   :  { %838 = vadd.xlane.f32.xlu1 %v837_v58  ;;  %v1891_v60 = vpop.f32.mrb[16].mxu0  ;;  %v831_v5 = vsel %vm62_vm1, %v781_v59, 0.0 }
 0x1d1   :  { %v747_v61 = vmax.f32 %v1891_v60, 0.0  ;;  %v654_v62 = vpop.f32.mrb[17].mxu0 }
 0x1d2   :  { %v745_v63 = vmax.f32 %v654_v62, 0.0  ;;  %v1892_v1 = vpop.f32.mrb[18].mxu0 }
 0x1d3   :  { %v748_v3 = vmax.f32 %v1892_v1, 0.0  ;;  %829 = vadd.xlane.f32.xlu0 %v828_v2  ;;  %v657_v4 = vpop.f32.mrb[19].mxu0  ;;  %v786_v6 = vmul.f32 %v2376_v13, %v747_v61 }
 0x1d4   :  { %v746_v7 = vmax.f32 %v657_v4, 0.0  ;;  %832 = vadd.xlane.f32.xlu1 %v831_v5  ;;  %v784_v10 = vmul.f32 %v2376_v13, %v745_v63 }
 0x1d5   :  { %v846_v8 = vsel %vm62_vm1, %v786_v6, 0.0  ;;  %v787_v9 = vmul.f32 %v2376_v13, %v748_v3 }
 0x1d6   :  { %v785_v12 = vmul.f32 %v2376_v13, %v746_v7  ;;  %v840_v17 = vsel %vm62_vm1, %v784_v10, 0.0 }
 0x1d7   :  { %847 = vadd.xlane.f32.xlu0 %v846_v8  ;;  %v849_v11 = vsel %vm62_vm1, %v787_v9, 0.0 }
 0x1d8   :  { %850 = vadd.xlane.f32.xlu1 %v849_v11  ;;  %v1895_v21 = vpop.f32.mrb[20].mxu0  ;;  %v843_v20 = vsel %vm62_vm1, %v785_v12, 0.0 }
 0x1d9   :  { %v751_v24 = vmax.f32 %v1895_v21, 0.0  ;;  %v670_v14 = vpop.f32.mrb[21].mxu0 }
 0x1da   :  { %v749_v15 = vmax.f32 %v670_v14, 0.0  ;;  %v1896_v16 = vpop.f32.mrb[22].mxu0 }
 0x1db   :  { %v752_v18 = vmax.f32 %v1896_v16, 0.0  ;;  %841 = vadd.xlane.f32.xlu0 %v840_v17  ;;  %v673_v19 = vpop.f32.mrb[23].mxu0  ;;  %v790_v22 = vmul.f32 %v2376_v13, %v751_v24 }
 0x1dc   :  { %v750_v23 = vmax.f32 %v673_v19, 0.0  ;;  %844 = vadd.xlane.f32.xlu1 %v843_v20  ;;  %v788_v27 = vmul.f32 %v2376_v13, %v749_v15 }
 0x1dd   :  { %v858_v25 = vsel %vm62_vm1, %v790_v22, 0.0  ;;  %v791_v26 = vmul.f32 %v2376_v13, %v752_v18 }
 0x1de   :  { %v789_v29 = vmul.f32 %v2376_v13, %v750_v23  ;;  %v852_v35 = vsel %vm62_vm1, %v788_v27, 0.0 }
 0x1df   :  { %859 = vadd.xlane.f32.xlu0 %v858_v25  ;;  %v861_v28 = vsel %vm62_vm1, %v791_v26, 0.0 }
 0x1e0   :  { %862 = vadd.xlane.f32.xlu1 %v861_v28  ;;  %v1899_v30 = vpop.f32.mrb[24].mxu0  ;;  %v855_v38 = vsel %vm62_vm1, %v789_v29, 0.0 }
 0x1e1   :  { %v755_v31 = vmax.f32 %v1899_v30, 0.0  ;;  %v686_v32 = vpop.f32.mrb[25].mxu0 }
 0x1e2   :  { %v753_v33 = vmax.f32 %v686_v32, 0.0  ;;  %v1900_v34 = vpop.f32.mrb[26].mxu0  ;;  %v1959_v32 = vld [vmem:[%s2829_s7] sm:$0xff]  }
 0x1e3   :  { %v756_v36 = vmax.f32 %v1900_v34, 0.0  ;;  %853 = vadd.xlane.f32.xlu0 %v852_v35  ;;  %v689_v37 = vpop.f32.mrb[27].mxu0  ;;  %v794_v39 = vmul.f32 %v2376_v13, %v755_v31  ;;  %1910 = vmatpush3.bf16.msra.mxu1 %v1959_v32 }
 0x1e4   :  { %v754_v40 = vmax.f32 %v689_v37, 0.0  ;;  %856 = vadd.xlane.f32.xlu1 %v855_v38  ;;  %v792_v43 = vmul.f32 %v2376_v13, %v753_v33  ;;  %1923 = vmatprep.subr.bf16.mxu1 %v2839_v0 }
 0x1e5   :  { %v870_v41 = vsel %vm62_vm1, %v794_v39, 0.0  ;;  %v795_v42 = vmul.f32 %v2376_v13, %v756_v36 }
 0x1e6   :  { %v793_v45 = vmul.f32 %v2376_v13, %v754_v40  ;;  %v864_v51 = vsel %vm62_vm1, %v792_v43, 0.0 }
 0x1e7   :  { %871 = vadd.xlane.f32.xlu0 %v870_v41  ;;  %v873_v44 = vsel %vm62_vm1, %v795_v42, 0.0 }
 0x1e8   :  { %874 = vadd.xlane.f32.xlu1 %v873_v44  ;;  %v1903_v46 = vpop.f32.mrb[28].mxu0  ;;  %v867_v54 = vsel %vm62_vm1, %v793_v45, 0.0 }
 0x1e9   :  { %v759_v47 = vmax.f32 %v1903_v46, 0.0  ;;  %v702_v48 = vpop.f32.mrb[29].mxu0 }
 0x1ea   :  { %v757_v49 = vmax.f32 %v702_v48, 0.0  ;;  %v1904_v50 = vpop.f32.mrb[30].mxu0 }
 0x1eb   :  { %v760_v52 = vmax.f32 %v1904_v50, 0.0  ;;  %865 = vadd.xlane.f32.xlu0 %v864_v51  ;;  %v705_v53 = vpop.f32.mrb[31].mxu0  ;;  %v798_v55 = vmul.f32 %v2376_v13, %v759_v47 }
 0x1ec   :  { %v758_v56 = vmax.f32 %v705_v53, 0.0  ;;  %868 = vadd.xlane.f32.xlu1 %v867_v54  ;;  %v796_v59 = vmul.f32 %v2376_v13, %v757_v49 }
 0x1ed   :  { %v882_v57 = vsel %vm62_vm1, %v798_v55, 0.0  ;;  %v799_v58 = vmul.f32 %v2376_v13, %v760_v52 }
 0x1ee   :  { %v797_v61 = vmul.f32 %v2376_v13, %v758_v56  ;;  %v876_v4 = vsel %vm62_vm1, %v796_v59, 0.0 }
 0x1ef   :  { %883 = vadd.xlane.f32.xlu0 %v882_v57  ;;  %v885_v60 = vsel %vm62_vm1, %v799_v58, 0.0 }
 0x1f0   :  { %886 = vadd.xlane.f32.xlu1 %v885_v60  ;;  %v1907_v62 = vpop.f32.mrb[32].mxu0  ;;  %v879_v6 = vsel %vm62_vm1, %v797_v61, 0.0 }
 0x1f1   :  { %v718_v63 = vpop.f32.mrb[33].mxu0  ;;  %v763_v1 = vmax.f32 %v1907_v62, 0.0 }
 0x1f2   :  { %v761_v2 = vmax.f32 %v718_v63, 0.0  ;;  %v1908_v3 = vpop.f32.mrb[34].mxu0 }
 0x1f3   :  { %877 = vadd.xlane.f32.xlu0 %v876_v4  ;;  %v721_v5 = vpop.f32.mrb[35].mxu0  ;;  %v764_v7 = vmax.f32 %v1908_v3, 0.0  ;;  %v802_v12 = vmul.f32 %v2376_v13, %v763_v1 }
 0x1f4   :  { %v762_v8 = vmax.f32 %v721_v5, 0.0  ;;  %880 = vadd.xlane.f32.xlu1 %v879_v6  ;;  %v800_v9 = vmul.f32 %v2376_v13, %v761_v2 }
 0x1f5   :  { %v803_v24 = vmul.f32 %v2376_v13, %v764_v7  ;;  %v894_v14 = vsel %vm62_vm1, %v802_v12, 0.0 }
 0x1f6   :  { %v888_v10 = vsel %vm62_vm1, %v800_v9, 0.0  ;;  %v801_v11 = vmul.f32 %v2376_v13, %v762_v8 }
 0x1f7   :  { %889 = vadd.xlane.f32.xlu0 %v888_v10  ;;  %v897_v15 = vsel %vm62_vm1, %v803_v24, 0.0 }
 0x1f8   :  { %v891_v21 = vsel %vm62_vm1, %v801_v11, 0.0 }
 0x1f9   :  { %892 = vadd.xlane.f32.xlu1 %v891_v21 }
 0x1fb   :  { %895 = vadd.xlane.f32.xlu0 %v894_v14 }
 0x1fd   :  { %898 = vadd.xlane.f32.xlu1 %v897_v15 }
 0x24b   :  { %v812_v16 = vpop.xlane.xlu1 %811 }
 0x24c   :  { %v806_v17 = vpop.xlane.xlu0 %805  ;;  %v1671_v18 = vmul.f32 -1.442695, %v812_v16 }
 0x24d   :  { %v1669_v19 = vmul.f32 -1.442695, %v806_v17 }
 0x24e   :  { %1965 = vpow2.f32 %v1671_v18 }
 0x24f   :  { %v815_v20 = vpop.xlane.xlu1 %814  ;;  %1967 = vpow2.f32 %v1669_v19 }
 0x250   :  { %v809_v22 = vpop.xlane.xlu0 %808  ;;  %v1672_v23 = vmul.f32 -1.442695, %v815_v20 }
 0x251   :  { %v1670_v27 = vmul.f32 -1.442695, %v809_v22 }
 0x252   :  { %1969 = vpow2.f32 %v1672_v23 }
 0x253   :  { %1971 = vpow2.f32 %v1670_v27 }
 0x254   :  { %v824_v25 = vpop.xlane.xlu0 %823 }
 0x255   :  { %v827_v26 = vpop.xlane.xlu1 %826  ;;  %v1675_v13 = vmul.f32 -1.442695, %v824_v25 }
 0x256   :  { %v1676_v30 = vmul.f32 -1.442695, %v827_v26 }
 0x257   :  { %1973 = vpow2.f32 %v1675_v13 }
 0x258   :  { %v818_v28 = vpop.xlane.xlu0 %817  ;;  %v1966_v31 = vpop.eup %1965  ;;  %1975 = vpow2.f32 %v1676_v30 }
 0x259   :  { %v821_v29 = vpop.xlane.xlu1 %820  ;;  %v1968_v33 = vpop.eup %1967  ;;  %v1673_v35 = vmul.f32 -1.442695, %v818_v28  ;;  %v998_v37 = vadd.f32 1.0, %v1966_v31 }
 0x25a   :  { %v996_v38 = vadd.f32 1.0, %v1968_v33  ;;  %v1674_v39 = vmul.f32 -1.442695, %v821_v29 }
 0x25b   :  { %1977 = vpow2.f32 %v1673_v35 }
 0x25c   :  { %v836_v34 = vpop.xlane.xlu0 %835  ;;  %v1970_v40 = vpop.eup %1969  ;;  %1979 = vrcp.f32 %v998_v37 }
 0x25d   :  { %v839_v36 = vpop.xlane.xlu1 %838  ;;  %v1679_v41 = vmul.f32 -1.442695, %v836_v34  ;;  %1981 = vrcp.f32 %v996_v38  ;;  %v1972_v44 = vpop.eup %1971  ;;  %v999_v45 = vadd.f32 1.0, %v1970_v40 }
 0x25e   :  { %1983 = vpow2.f32 %v1674_v39  ;;  %v1680_v47 = vmul.f32 -1.442695, %v839_v36  ;;  %v997_v49 = vadd.f32 1.0, %v1972_v44 }
 0x25f   :  { %1985 = vpow2.f32 %v1679_v41 }
 0x260   :  { %v830_v42 = vpop.xlane.xlu0 %829  ;;  %1987 = vrcp.f32 %v999_v45 }
 0x261   :  { %v833_v43 = vpop.xlane.xlu1 %832  ;;  %v1974_v46 = vpop.eup %1973  ;;  %v1677_v48 = vmul.f32 -1.442695, %v830_v42  ;;  %1989 = vpow2.f32 %v1680_v47 }
 0x262   :  { %v1002_v51 = vadd.f32 1.0, %v1974_v46  ;;  %v1976_v52 = vpop.eup %1975  ;;  %v1678_v53 = vmul.f32 -1.442695, %v833_v43 }
 0x263   :  { %1991 = vpow2.f32 %v1677_v48  ;;  %v1003_v58 = vadd.f32 1.0, %v1976_v52 }
 0x264   :  { %v848_v50 = vpop.xlane.xlu0 %847  ;;  %1993 = vrcp.f32 %v997_v49 }
 0x265   :  { %v851_v54 = vpop.xlane.xlu1 %850  ;;  %v1683_v55 = vmul.f32 -1.442695, %v848_v50  ;;  %v1978_v56 = vpop.eup %1977  ;;  %1995 = vrcp.f32 %v1002_v51 }
 0x266   :  { %v1980_v57 = vpop.eup %1979  ;;  %1997 = vpow2.f32 %v1678_v53  ;;  %v1000_v61 = vadd.f32 1.0, %v1978_v56  ;;  %v1684_v8 = vmul.f32 -1.442695, %v851_v54 }
 0x267   :  { %v1982_v59 = vpop.eup %1981  ;;  %1999 = vpow2.f32 %v1683_v55  ;;  %v1096_v1 = vmul.f32 1.442695, %v1980_v57 }
 0x268   :  { %v1984_v60 = vpop.eup %1983  ;;  %v842_v62 = vpop.xlane.xlu0 %841  ;;  %v1092_v3 = vmul.f32 1.442695, %v1982_v59  ;;  %2001 = vrcp.f32 %v1003_v58 }
 0x269   :  { %v1986_v63 = vpop.eup %1985  ;;  %v845_v2 = vpop.xlane.xlu1 %844  ;;  %v1001_v4 = vadd.f32 1.0, %v1984_v60  ;;  %2003 = vrcp.f32 %v1000_v61  ;;  %v1681_v10 = vmul.f32 -1.442695, %v842_v62 }
 0x26a   :  { %v1988_v5 = vpop.eup %1987  ;;  %v1006_v6 = vadd.f32 1.0, %v1986_v63  ;;  %2005 = vpow2.f32 %v1096_v1  ;;  %v1682_v28 = vmul.f32 -1.442695, %v845_v2 }
 0x26b   :  { %v1990_v7 = vpop.eup %1989  ;;  %2007 = vpow2.f32 %v1092_v3  ;;  %v1098_v21 = vmul.f32 1.442695, %v1988_v5  ;;  %v2461_v3 = vld [vmem:[%s2825_s0] sm:$0xff]  }
 0x26c   :  { %v860_v11 = vpop.xlane.xlu0 %859  ;;  %2009 = vrcp.f32 %v1001_v4  ;;  %v1007_v15 = vadd.f32 1.0, %v1990_v7  ;;  %2845 = vst [vmem:[#allocation2_spill] sm:$0xff] %v2461_v3  ;;  %v2837_v4 = vunpack.c.l.bf16 %v2461_v3  ;;  %v2838_v5 = vunpack.c.h.bf16 %v2461_v3 }
 0x26d   :  { %v1992_v9 = vpop.eup %1991  ;;  %v863_v24 = vpop.xlane.xlu1 %862  ;;  %2011 = vrcp.f32 %v1006_v6  ;;  %v1687_v32 = vmul.f32 -1.442695, %v860_v11 }
 0x26e   :  { %v1994_v12 = vpop.eup %1993  ;;  %v1004_v17 = vadd.f32 1.0, %v1992_v9  ;;  %2013 = vpow2.f32 %v1684_v8  ;;  %v1688_v36 = vmul.f32 -1.442695, %v863_v24  ;;  %v1934_v11 = vpack.i.bf16 %v2838_v5, %v2837_v4  ;;  %v2643_v4 = vld [vmem:[%s2831_s2 + $0x58] sm:$0xff]  }
 0x26f   :  { %v1996_v14 = vpop.eup %1995  ;;  %v1094_v19 = vmul.f32 1.442695, %v1994_v12  ;;  %2015 = vpow2.f32 %v1681_v10  ;;  %v1960_v12 = vld [vmem:[%s2830_s9] sm:$0xff]  }
 0x270   :  { %v1998_v16 = vpop.eup %1997  ;;  %2017 = vpow2.f32 %v1098_v21  ;;  %v1104_v20 = vmul.f32 1.442695, %v1996_v14  ;;  %v854_v25 = vpop.xlane.xlu0 %853  ;;  %1935 = vrot.lane.b32.xlu0 %v1934_v11, %s2164_s30  ;;  %1916 = vmatpush3.bf16.msra.mxu0 %v1960_v12 }
 0x271   :  { %v2000_v18 = vpop.eup %1999  ;;  %2019 = vrcp.f32 %v1007_v15  ;;  %v1005_v23 = vadd.f32 1.0, %v1998_v16  ;;  %v857_v27 = vpop.xlane.xlu1 %856  ;;  %v1685_v39 = vmul.f32 -1.442695, %v854_v25  ;;  %v1961_v16 = vld [vmem:[%s2830_s9 + $0x8] sm:$0xff]   ;;  %1917 = vmatprep.subr.bf16.mxu0 %v2839_v0 }
 0x272   :  { %v2002_v22 = vpop.eup %2001  ;;  %2021 = vrcp.f32 %v1004_v17  ;;  %v1010_v26 = vadd.f32 1.0, %v2000_v18  ;;  %v1686_v50 = vmul.f32 -1.442695, %v857_v27 }
 0x273   :  { %v2004_v13 = vpop.eup %2003  ;;  %2023 = vpow2.f32 %v1094_v19  ;;  %v1106_v30 = vmul.f32 1.442695, %v2002_v22 }
 0x274   :  { %v2446_v29 = vpop.eup %2005  ;;  %2025 = vpow2.f32 %v1104_v20  ;;  %v1100_v34 = vmul.f32 1.442695, %v2004_v13  ;;  %v872_v37 = vpop.xlane.xlu0 %871  ;;  %1918 = vmatpush3.bf16.msra.mxu0 %v1961_v16 }
 0x275   :  { %v2448_v31 = vpop.eup %2007  ;;  %2027 = vrcp.f32 %v1005_v23  ;;  %v875_v40 = vpop.xlane.xlu1 %874  ;;  %v1691_v58 = vmul.f32 -1.442695, %v872_v37 }
 0x276   :  { %v2010_v33 = vpop.eup %2009  ;;  %2029 = vrcp.f32 %v1010_v26  ;;  %v1692_v15 = vmul.f32 -1.442695, %v875_v40 }
 0x277   :  { %v2012_v35 = vpop.eup %2011  ;;  %2031 = vpow2.f32 %v1682_v28  ;;  %v1102_v42 = vmul.f32 1.442695, %v2010_v33 }
 0x278   :  { %v2014_v38 = vpop.eup %2013  ;;  %2033 = vpow2.f32 %v1106_v30  ;;  %v1112_v44 = vmul.f32 1.442695, %v2012_v35  ;;  %v866_v51 = vpop.xlane.xlu0 %865 }
 0x279   :  { %v2016_v41 = vpop.eup %2015  ;;  %2035 = vpow2.f32 %v1687_v32  ;;  %v1011_v46 = vadd.f32 1.0, %v2014_v38  ;;  %v869_v54 = vpop.xlane.xlu1 %868  ;;  %v1689_v60 = vmul.f32 -1.442695, %v866_v51 }
 0x27a   :  { %v2450_v43 = vpop.eup %2017  ;;  %2037 = vpow2.f32 %v1100_v34  ;;  %v1008_v48 = vadd.f32 1.0, %v2016_v41  ;;  %v1690_v10 = vmul.f32 -1.442695, %v869_v54 }
 0x27b   :  { %v2020_v45 = vpop.eup %2019  ;;  %2039 = vpow2.f32 %v1688_v36 }
 0x27c   :  { %v2022_v47 = vpop.eup %2021  ;;  %2041 = vpow2.f32 %v1685_v39  ;;  %v1114_v53 = vmul.f32 1.442695, %v2020_v45  ;;  %v884_v2 = vpop.xlane.xlu0 %883 }
 0x27d   :  { %v2452_v49 = vpop.eup %2023  ;;  %2043 = vpow2.f32 %v1102_v42  ;;  %v1108_v56 = vmul.f32 1.442695, %v2022_v47  ;;  %v887_v8 = vpop.xlane.xlu1 %886  ;;  %v1695_v25 = vmul.f32 -1.442695, %v884_v2 }
 0x27e   :  { %v2454_v52 = vpop.eup %2025  ;;  %2045 = vpow2.f32 %v1112_v44  ;;  %v1696_v13 = vmul.f32 -1.442695, %v887_v8  ;;  %v1171_v16 = vadd.f32 %v2452_v49, %v2450_v43 }
 0x27f   :  { %v2028_v55 = vpop.eup %2027  ;;  %2047 = vrcp.f32 %v1011_v46 }
 0x280   :  { %v2030_v57 = vpop.eup %2029  ;;  %2049 = vrcp.f32 %v1008_v48  ;;  %v1110_v62 = vmul.f32 1.442695, %v2028_v55  ;;  %v878_v22 = vpop.xlane.xlu0 %877 }
 0x281   :  { %v2032_v59 = vpop.eup %2031  ;;  %2051 = vpow2.f32 %v1686_v50  ;;  %v1120_v1 = vmul.f32 1.442695, %v2030_v57  ;;  %v881_v26 = vpop.xlane.xlu1 %880  ;;  %v1693_v37 = vmul.f32 -1.442695, %v878_v22 }
 0x282   :  { %v2456_v61 = vpop.eup %2033  ;;  %2053 = vpow2.f32 %v1114_v53  ;;  %v1009_v7 = vadd.f32 1.0, %v2032_v59  ;;  %v1694_v40 = vmul.f32 -1.442695, %v881_v26 }
 0x283   :  { %v2036_v63 = vpop.eup %2035  ;;  %2055 = vpow2.f32 %v1108_v56 }
 0x284   :  { %v2465_v6 = vpop.eup %2037  ;;  %2057 = vpow2.f32 %v1691_v58  ;;  %v1014_v24 = vadd.f32 1.0, %v2036_v63  ;;  %v890_v38 = vpop.xlane.xlu0 %889 }
 0x285   :  { %v2040_v9 = vpop.eup %2039  ;;  %2059 = vpow2.f32 %v1689_v60  ;;  %v1697_v48 = vmul.f32 -1.442695, %v890_v38 }
 0x286   :  { %v2042_v21 = vpop.eup %2041  ;;  %2061 = vpow2.f32 %v1110_v62  ;;  %v1015_v18 = vadd.f32 1.0, %v2040_v9  ;;  %v893_v41 = vpop.xlane.xlu1 %892 }
 0x287   :  { %v2474_v14 = vpop.eup %2043  ;;  %2063 = vpow2.f32 %v1120_v1  ;;  %v1012_v20 = vadd.f32 1.0, %v2042_v21  ;;  %v1698_v51 = vmul.f32 -1.442695, %v893_v41 }
 0x288   :  { %v2479_v17 = vpop.eup %2045  ;;  %2065 = vrcp.f32 %v1009_v7  ;;  %v896_v55 = vpop.xlane.xlu0 %895  ;;  %v1172_v26 = vadd.f32 %v2474_v14, %v1171_v16 }
 0x289   :  { %v2048_v19 = vpop.eup %2047  ;;  %2067 = vpow2.f32 %v1690_v10  ;;  %v1699_v63 = vmul.f32 -1.442695, %v896_v55  ;;  %v1156_v10 = vadd.f32 %v2448_v31, %v2446_v29 }
 0x28a   :  { %v2050_v23 = vpop.eup %2049  ;;  %2069 = vrcp.f32 %v1014_v24  ;;  %v1122_v30 = vmul.f32 1.442695, %v2048_v19  ;;  %v899_v58 = vpop.xlane.xlu1 %898  ;;  %v1173_v41 = vadd.f32 %v2456_v61, %v1172_v26 }
 0x28b   :  { %v2052_v27 = vpop.eup %2051  ;;  %2071 = vpow2.f32 %v1692_v15  ;;  %v1116_v33 = vmul.f32 1.442695, %v2050_v23  ;;  %v1700_v2 = vmul.f32 -1.442695, %v899_v58  ;;  %v1157_v24 = vadd.f32 %v2465_v6, %v1156_v10 }
 0x28c   :  { %v2482_v28 = vpop.eup %2053  ;;  %2073 = vrcp.f32 %v1015_v18  ;;  %v1013_v35 = vadd.f32 1.0, %v2052_v27 }
 0x28d   :  { %v2484_v32 = vpop.eup %2055  ;;  %2075 = vrcp.f32 %v1012_v20 }
 0x28e   :  { %v2058_v34 = vpop.eup %2057  ;;  %2077 = vpow2.f32 %v1695_v25 }
 0x28f   :  { %v2060_v36 = vpop.eup %2059  ;;  %2079 = vpow2.f32 %v1696_v13  ;;  %v1018_v44 = vadd.f32 1.0, %v2058_v34 }
 0x290   :  { %v2486_v39 = vpop.eup %2061  ;;  %2081 = vpow2.f32 %v1122_v30  ;;  %v1016_v46 = vadd.f32 1.0, %v2060_v36  ;;  %v1158_v30 = vadd.f32 %v2454_v52, %v1157_v24 }
 0x291   :  { %v2488_v42 = vpop.eup %2063  ;;  %2083 = vpow2.f32 %v1116_v33 }
 0x292   :  { %v2066_v45 = vpop.eup %2065  ;;  %2085 = vrcp.f32 %v1013_v35 }
 0x293   :  { %v2068_v47 = vpop.eup %2067  ;;  %2087 = vpow2.f32 %v1693_v37  ;;  %v1118_v54 = vmul.f32 1.442695, %v2066_v45  ;;  %v1159_v37 = vadd.f32 %v2484_v32, %v1158_v30 }
 0x294   :  { %v2070_v50 = vpop.eup %2069  ;;  %2089 = vpow2.f32 %v1694_v40  ;;  %v1017_v57 = vadd.f32 1.0, %v2068_v47  ;;  %v1174_v47 = vadd.f32 %v2486_v39, %v1173_v41 }
 0x295   :  { %v2072_v53 = vpop.eup %2071  ;;  %2091 = vrcp.f32 %v1018_v44  ;;  %v1128_v60 = vmul.f32 1.442695, %v2070_v50  ;;  %v1160_v50 = vadd.f32 %v2479_v17, %v1159_v37 }
 0x296   :  { %v2074_v56 = vpop.eup %2073  ;;  %2093 = vrcp.f32 %v1016_v46  ;;  %v1019_v8 = vadd.f32 1.0, %v2072_v53 }
 0x297   :  { %v2076_v59 = vpop.eup %2075  ;;  %2095 = vpow2.f32 %v1697_v48  ;;  %v1130_v11 = vmul.f32 1.442695, %v2074_v56 }
 0x298   :  { %v2078_v62 = vpop.eup %2077  ;;  %2097 = vpow2.f32 %v1698_v51  ;;  %v1124_v18 = vmul.f32 1.442695, %v2076_v59 }
 0x299   :  { %v2080_v1 = vpop.eup %2079  ;;  %2099 = vpow2.f32 %v1118_v54  ;;  %v1022_v22 = vadd.f32 1.0, %v2078_v62 }
 0x29a   :  { %v2490_v7 = vpop.eup %2081  ;;  %2101 = vrcp.f32 %v1017_v57  ;;  %v1023_v34 = vadd.f32 1.0, %v2080_v1 }
 0x29b   :  { %v2492_v9 = vpop.eup %2083  ;;  %2103 = vpow2.f32 %v1128_v60  ;;  %v1175_v60 = vadd.f32 %v2482_v28, %v1174_v47 }
 0x29c   :  { %v2086_v12 = vpop.eup %2085  ;;  %2105 = vpow2.f32 %v1699_v63  ;;  %v1161_v57 = vadd.f32 %v2492_v9, %v1160_v50 }
 0x29d   :  { %v2088_v21 = vpop.eup %2087  ;;  %2107 = vpow2.f32 %v1700_v2  ;;  %v1126_v27 = vmul.f32 1.442695, %v2086_v12 }
 0x29e   :  { %v2090_v15 = vpop.eup %2089  ;;  %2109 = vrcp.f32 %v1019_v8  ;;  %v1020_v19 = vadd.f32 1.0, %v2088_v21 }
 0x29f   :  { %v2092_v20 = vpop.eup %2091  ;;  %2111 = vpow2.f32 %v1130_v11  ;;  %v1021_v23 = vadd.f32 1.0, %v2090_v15  ;;  %v1162_v11 = vadd.f32 %v2488_v42, %v1161_v57 }
 0x2a0   :  { %v2094_v25 = vpop.eup %2093  ;;  %2113 = vrcp.f32 %v1020_v19  ;;  %v1136_v58 = vmul.f32 1.442695, %v2092_v20 }
 0x2a1   :  { %v2096_v13 = vpop.eup %2095  ;;  %2115 = vrcp.f32 %v1021_v23  ;;  %v1132_v38 = vmul.f32 1.442695, %v2094_v25 }
 0x2a2   :  { %v2098_v33 = vpop.eup %2097  ;;  %2117 = vpow2.f32 %v1124_v18  ;;  %v1024_v35 = vadd.f32 1.0, %v2096_v13 }
 0x2a3   :  { %v2501_v36 = vpop.eup %2099  ;;  %2119 = vrcp.f32 %v1022_v22  ;;  %v1025_v44 = vadd.f32 1.0, %v2098_v33 }
 0x2a4   :  { %v2102_v40 = vpop.eup %2101  ;;  %2121 = vpow2.f32 %v1126_v27  ;;  %v1176_v2 = vadd.f32 %v2501_v36, %v1175_v60 }
 0x2a5   :  { %v2505_v45 = vpop.eup %2103  ;;  %2123 = vrcp.f32 %v1024_v35  ;;  %v1134_v51 = vmul.f32 1.442695, %v2102_v40 }
 0x2a6   :  { %v2106_v46 = vpop.eup %2105  ;;  %2125 = vrcp.f32 %v1023_v34  ;;  %v1177_v18 = vadd.f32 %v2490_v7, %v1176_v2 }
 0x2a7   :  { %v2108_v48 = vpop.eup %2107  ;;  %2127 = vpow2.f32 %v1132_v38  ;;  %v1026_v53 = vadd.f32 1.0, %v2106_v46 }
 0x2a8   :  { %v2110_v54 = vpop.eup %2109  ;;  %2129 = vrcp.f32 %v1025_v44  ;;  %v1027_v55 = vadd.f32 1.0, %v2108_v48 }
 0x2a9   :  { %v2509_v56 = vpop.eup %2111  ;;  %2131 = vrcp.f32 %v1026_v53  ;;  %v1138_v8 = vmul.f32 1.442695, %v2110_v54 }
 0x2aa   :  { %v2114_v59 = vpop.eup %2113  ;;  %2133 = vrcp.f32 %v1027_v55 }
 0x2ab   :  { %v2116_v62 = vpop.eup %2115  ;;  %2135 = vpow2.f32 %v1134_v51  ;;  %v1140_v63 = vmul.f32 1.442695, %v2114_v59 }
 0x2ac   :  { %v2513_v1 = vpop.eup %2117  ;;  %2137 = vpow2.f32 %v1136_v58  ;;  %v1142_v12 = vmul.f32 1.442695, %v2116_v62 }
 0x2ad   :  { %v2120_v10 = vpop.eup %2119  ;;  %2139 = vpow2.f32 %v1140_v63  ;;  %v1163_v15 = vadd.f32 %v2513_v1, %v1162_v11 }
 0x2ae   :  { %v2517_v21 = vpop.eup %2121  ;;  %2141 = vpow2.f32 %v1138_v8  ;;  %v1144_v19 = vmul.f32 1.442695, %v2120_v10 }
 0x2af   :  { %v2124_v24 = vpop.eup %2123  ;;  %2143 = vpow2.f32 %v1142_v12  ;;  %v1178_v23 = vadd.f32 %v2517_v21, %v1177_v18  ;;  %v1164_v27 = vadd.f32 %v2505_v45, %v1163_v15  ;;  %v1713_v15 = vld [vmem:[%s2831_s2] sm:$0xff]   ;;  %v2574_v18 = vld [vmem:[%s2831_s2 + $0x10] sm:$0xff]  }
 0x2b0   :  { %v2126_v16 = vpop.eup %2125  ;;  %v1148_v25 = vmul.f32 1.442695, %v2124_v24  ;;  %2145 = vpow2.f32 %v1144_v19  ;;  %v2563_v24 = vld [vmem:[%s2831_s2 + $0x78] sm:$0xff]  }
 0x2b1   :  { %v2521_v20 = vpop.eup %2127  ;;  %v1146_v13 = vmul.f32 1.442695, %v2126_v16  ;;  %v1179_v38 = vadd.f32 %v2509_v56, %v1178_v23  ;;  %v1776_v16 = vld [vmem:[%s2831_s2 + $0x8] sm:$0xff]   ;;  %v2579_v19 = vld [vmem:[%s2831_s2 + $0x18] sm:$0xff]  }
 0x2b2   :  { %v2130_v22 = vpop.eup %2129  ;;  %v1165_v35 = vadd.f32 %v2521_v20, %v1164_v27  ;;  %2147 = vpow2.f32 %v1148_v25  ;;  %v2587_v25 = vld [vmem:[%s2831_s2 + $0x20] sm:$0xff]   ;;  %v1715_v27 = vunpack.c.h.bf16 %v1713_v15 }
 0x2b3   :  { %v2132_v26 = vpop.eup %2131  ;;  %v1150_v37 = vmul.f32 1.442695, %v2130_v22  ;;  %2149 = vpow2.f32 %v1146_v13  ;;  %v1718_v13 = vunpack.c.l.bf16 %v1776_v16 }
 0x2b4   :  { %v2134_v30 = vpop.eup %2133  ;;  %v1152_v33 = vmul.f32 1.442695, %v2132_v26  ;;  %v1714_v26 = vunpack.c.l.bf16 %v1713_v15 }
 0x2b5   :  { %v2525_v34 = vpop.eup %2135  ;;  %v1154_v41 = vmul.f32 1.442695, %v2134_v30  ;;  %v1719_v30 = vunpack.c.h.bf16 %v1776_v16 }
 0x2b6   :  { %v2529_v40 = vpop.eup %2137  ;;  %v1180_v46 = vadd.f32 %v2525_v34, %v1179_v38  ;;  %2151 = vpow2.f32 %v1152_v33  ;;  %v2592_v33 = vld [vmem:[%s2831_s2 + $0x28] sm:$0xff]   ;;  %v1723_v38 = vunpack.c.h.bf16 %v2574_v18 }
 0x2b7   :  { %v2531_v44 = vpop.eup %2139  ;;  %v1166_v47 = vadd.f32 %v2529_v40, %v1165_v35  ;;  %2153 = vpow2.f32 %v1150_v37  ;;  %v2597_v35 = vld [vmem:[%s2831_s2 + $0x30] sm:$0xff]   ;;  %v1722_v37 = vunpack.c.l.bf16 %v2574_v18  ;;  %v2653_v18 = vld [vmem:[%s2831_s2 + $0x60] sm:$0xff]  }
 0x2b8   :  { %v2535_v48 = vpop.eup %2141  ;;  %2155 = vpow2.f32 %v1154_v41  ;;  %v1726_v41 = vunpack.c.l.bf16 %v2579_v19  ;;  %v1738_v15 = vunpack.c.l.bf16 %v2597_v35 }
 0x2b9   :  { %v2537_v50 = vpop.eup %2143  ;;  %v1167_v51 = vadd.f32 %v2531_v44, %v1166_v47  ;;  %v1181_v53 = vadd.f32 %v2535_v48, %v1180_v46  ;;  %v1727_v46 = vunpack.c.h.bf16 %v2579_v19  ;;  %v2606_v47 = vld [vmem:[%s2831_s2 + $0x38] sm:$0xff]  }
 0x2ba   :  { %v2541_v54 = vpop.eup %2145  ;;  %v1742_v16 = vunpack.c.l.bf16 %v2606_v47 }
 0x2bb   :  { %v1182_v55 = vadd.f32 %v2537_v50, %v1181_v53  ;;  %v1168_v57 = vadd.f32 %v2541_v54, %v1167_v51  ;;  %v2611_v51 = vld [vmem:[%s2831_s2 + $0x40] sm:$0xff]  }
 0x2bc   :  { %v2545_v58 = vpop.eup %2147 }
 0x2bd   :  { %v2547_v59 = vpop.eup %2149  ;;  %v1169_v2 = vadd.f32 %v2545_v58, %v1168_v57 }
 0x2be   :  { %v1183_v62 = vadd.f32 %v2547_v59, %v1182_v55 }
 0x2c0   :  { %v2549_v60 = vpop.eup %2151 }
 0x2c1   :  { %2846 = vst [vmem:[#allocation3_spill] sm:$0xff] %v2549_v60  ;;  %v2552_v63 = vpop.eup %2153  ;;  %v1170_v10 = vadd.f32 %v2549_v60, %v1169_v2  ;;  %v1731_v2 = vunpack.c.h.bf16 %v2587_v25 }
 0x2c2   :  { %v2555_v8 = vpop.eup %2155  ;;  %v1184_v11 = vadd.f32 %v2552_v63, %v1183_v62  ;;  %v1730_v62 = vunpack.c.l.bf16 %v2587_v25  ;;  %v2638_v25 = vld [vmem:[%s2831_s2 + $0x50] sm:$0xff]  }
 0x2c3   :  { %2847 = vst [vmem:[#allocation4_spill] sm:$0xff] %v2555_v8  ;;  %2157 = vrcp.f32 %v1170_v10  ;;  %v2624_v10 = vld [vmem:[%s2831_s2 + $0x48] sm:$0xff]  }
 0x2c4   :  { %v1185_v12 = vadd.f32 %v2555_v8, %v1184_v11  ;;  %v1734_v11 = vunpack.c.l.bf16 %v2592_v33 }
 0x2c6   :  { %2159 = vrcp.f32 %v1185_v12 }
 0x2cd   :  { %v2581_v22 = vpop.eup %2157 }
 0x2ce   :  { %v1188_v55 = vmul.f32 %v2581_v22, %v2448_v31  ;;  %v1190_v57 = vmul.f32 %v2581_v22, %v2446_v29  ;;  %v1192_v29 = vmul.f32 %v2581_v22, %v2465_v6  ;;  %v1194_v31 = vmul.f32 %v2581_v22, %v2454_v52  ;;  %v2671_v52 = vld [vmem:[%s2831_s2 + $0x68] sm:$0xff]  }
 0x2cf   :  { %v1196_v60 = vmul.f32 %v2581_v22, %v2484_v32 }
 0x2d0   :  { %v2613_v53 = vpop.eup %2159  ;;  %v1284_v12 = vmul.f32 %v1714_v26, %v1188_v55  ;;  %v1286_v3 = vmul.f32 %v1718_v13, %v1190_v57  ;;  %v1288_v26 = vmul.f32 %v1722_v37, %v1192_v29  ;;  %v1198_v55 = vmul.f32 %v2581_v22, %v2479_v17 }
 0x2d1   :  { %v1189_v5 = vmul.f32 %v2613_v53, %v2452_v49  ;;  %v1191_v19 = vmul.f32 %v2613_v53, %v2450_v43  ;;  %v1193_v8 = vmul.f32 %v2613_v53, %v2474_v14  ;;  %v1195_v13 = vmul.f32 %v2613_v53, %v2456_v61 }
 0x2d2   :  { %v1290_v6 = vmul.f32 %v1726_v41, %v1194_v31  ;;  %v1316_v32 = vsel %vm62_vm1, %v1284_v12, 0.0  ;;  %v1317_v43 = vsel %vm62_vm1, %v1286_v3, 0.0  ;;  %v1197_v0 = vmul.f32 %v2613_v53, %v2486_v39 }
 0x2d3   :  { %v1285_v14 = vmul.f32 %v1715_v27, %v1189_v5  ;;  %v1287_v23 = vmul.f32 %v1719_v30, %v1191_v19  ;;  %v1766_v37 = vunpack.c.l.bf16 %v2671_v52  ;;  %v1767_v29 = vunpack.c.h.bf16 %v2671_v52 }
 0x2d4   :  { %v1318_v61 = vadd.f32 %v1317_v43, %v1316_v32  ;;  %v1200_v17 = vmul.f32 %v2581_v22, %v2492_v9  ;;  %v1289_v49 = vmul.f32 %v1723_v38, %v1193_v8  ;;  %v1292_v57 = vmul.f32 %v1730_v62, %v1196_v60 }
 0x2d5   :  { %v1319_v5 = vsel %vm62_vm1, %v1288_v26, 0.0  ;;  %v1199_v27 = vmul.f32 %v2613_v53, %v2482_v28  ;;  %v1202_v3 = vmul.f32 %v2581_v22, %v2488_v42  ;;  %v1291_v30 = vmul.f32 %v1727_v46, %v1195_v13 }
 0x2d6   :  { %v1320_v39 = vadd.f32 %v1319_v5, %v1318_v61  ;;  %v1294_v41 = vmul.f32 %v1734_v11, %v1198_v55  ;;  %v1321_v12 = vsel %vm62_vm1, %v1290_v6, 0.0  ;;  %v1347_v31 = vsel %vm62_vm1, %v1285_v14, 0.0 }
 0x2d7   :  { %v1348_v19 = vsel %vm62_vm1, %v1287_v23, 0.0  ;;  %v1201_v9 = vmul.f32 %v2613_v53, %v2501_v36  ;;  %v1204_v60 = vmul.f32 %v2581_v22, %v2513_v1  ;;  %v1293_v38 = vmul.f32 %v1731_v2, %v1197_v0 }
 0x2d8   :  { %v1322_v8 = vadd.f32 %v1321_v12, %v1320_v39  ;;  %v1349_v28 = vadd.f32 %v1348_v19, %v1347_v31  ;;  %v1296_v62 = vmul.f32 %v1738_v15, %v1200_v17  ;;  %v1323_v42 = vsel %vm62_vm1, %v1292_v57, 0.0 }
 0x2d9   :  { %v1350_v46 = vsel %vm62_vm1, %v1289_v49, 0.0  ;;  %v1203_v11 = vmul.f32 %v2613_v53, %v2490_v7  ;;  %v1206_v23 = vmul.f32 %v2581_v22, %v2505_v45  ;;  %v2848_v36 = vunpack.c.h.bf16 %v2592_v33 }
 0x2da   :  { %v1324_v6 = vadd.f32 %v1323_v42, %v1322_v8  ;;  %v1351_v43 = vadd.f32 %v1350_v46, %v1349_v28  ;;  %v1298_v1 = vmul.f32 %v1742_v16, %v1202_v3  ;;  %v1325_v13 = vsel %vm62_vm1, %v1294_v41, 0.0 }
 0x2db   :  { %v1295_v26 = vmul.f32 %v2848_v36, %v1199_v27  ;;  %v1352_v0 = vsel %vm62_vm1, %v1291_v30, 0.0  ;;  %v1205_v2 = vmul.f32 %v2613_v53, %v2517_v21  ;;  %v1208_v15 = vmul.f32 %v2581_v22, %v2521_v20 }
 0x2dc   :  { %v1326_v7 = vadd.f32 %v1325_v13, %v1324_v6  ;;  %v1353_v49 = vadd.f32 %v1352_v0, %v1351_v43  ;;  %v2849_v45 = vunpack.c.h.bf16 %v2597_v35  ;;  %v2850_v57 = vunpack.c.l.bf16 %v2611_v51 }
 0x2dd   :  { %v1327_v16 = vsel %vm62_vm1, %v1296_v62, 0.0  ;;  %v1354_v14 = vsel %vm62_vm1, %v1293_v38, 0.0  ;;  %v1207_v32 = vmul.f32 %v2613_v53, %v2509_v56  ;;  %v1210_v21 = vmul.f32 %v2581_v22, %v2529_v40 }
 0x2de   :  { %v1297_v55 = vmul.f32 %v2849_v45, %v1201_v9  ;;  %v1300_v33 = vmul.f32 %v2850_v57, %v1204_v60  ;;  %v1328_v61 = vadd.f32 %v1327_v16, %v1326_v7  ;;  %v1355_v20 = vadd.f32 %v1354_v14, %v1353_v49 }
 0x2df   :  { %v2851_v17 = vunpack.c.h.bf16 %v2606_v47  ;;  %v2852_v35 = vunpack.c.l.bf16 %v2624_v10  ;;  %v1329_v3 = vsel %vm62_vm1, %v1298_v1, 0.0  ;;  %v1356_v30 = vsel %vm62_vm1, %v1295_v26, 0.0  ;;  %v1789_v47 = vld [vmem:[%s2831_s2 + $0x70] sm:$0xff]  }
 0x2e0   :  { %v1209_v39 = vmul.f32 %v2613_v53, %v2525_v34  ;;  %v1212_v56 = vmul.f32 %v2581_v22, %v2531_v44  ;;  %v1330_v41 = vadd.f32 %v1329_v3, %v1328_v61  ;;  %v1357_v40 = vadd.f32 %v1356_v30, %v1355_v20 }
 0x2e1   :  { %v1299_v5 = vmul.f32 %v2851_v17, %v1203_v11  ;;  %v1302_v27 = vmul.f32 %v2852_v35, %v1206_v23  ;;  %v2853_v12 = vunpack.c.h.bf16 %v2611_v51  ;;  %v2854_v19 = vunpack.c.l.bf16 %v2638_v25  ;;  %v2862_v17 = vld [vmem:[#allocation4_spill] sm:$0xff] }
 0x2e2   :  { %v1331_v60 = vsel %vm62_vm1, %v1300_v33, 0.0  ;;  %v1358_v8 = vsel %vm62_vm1, %v1297_v55, 0.0  ;;  %v1211_v34 = vmul.f32 %v2613_v53, %v2535_v48  ;;  %v1214_v44 = vmul.f32 %v2581_v22, %v2541_v54 }
 0x2e3   :  { %v1301_v31 = vmul.f32 %v2853_v12, %v1205_v2  ;;  %v1304_v9 = vmul.f32 %v2854_v19, %v1208_v15  ;;  %v1332_v28 = vadd.f32 %v1331_v60, %v1330_v41  ;;  %v1359_v38 = vadd.f32 %v1358_v8, %v1357_v40 }
 0x2e4   :  { %v2855_v62 = vunpack.c.h.bf16 %v2624_v10  ;;  %v2856_v51 = vunpack.c.l.bf16 %v2643_v4  ;;  %v1333_v11 = vsel %vm62_vm1, %v1302_v27, 0.0  ;;  %v1360_v23 = vsel %vm62_vm1, %v1299_v5, 0.0 }
 0x2e5   :  { %v1213_v6 = vmul.f32 %v2613_v53, %v2537_v50  ;;  %v1770_v43 = vunpack.c.l.bf16 %v1789_v47  ;;  %v1334_v48 = vadd.f32 %v1333_v11, %v1332_v28  ;;  %v1361_v36 = vadd.f32 %v1360_v23, %v1359_v38 }
 0x2e6   :  { %v1303_v42 = vmul.f32 %v2855_v62, %v1207_v32  ;;  %v1306_v46 = vmul.f32 %v2856_v51, %v1210_v21  ;;  %v2857_v54 = vunpack.c.h.bf16 %v2638_v25  ;;  %v2858_v1 = vunpack.c.l.bf16 %v2653_v18  ;;  %v1962_v62 = vld [vmem:[%s2832_s11] sm:$0xff]  }
 0x2e7   :  { %v1335_v13 = vsel %vm62_vm1, %v1304_v9, 0.0  ;;  %v1362_v0 = vsel %vm62_vm1, %v1301_v31, 0.0  ;;  %v1215_v2 = vmul.f32 %v2613_v53, %v2547_v59  ;;  %v1216_v15 = vmul.f32 %v2581_v22, %v2545_v58  ;;  %v1701_v51 = vld [vmem:[%s2833_s8] ss:$0 sm:$0xff] }
 0x2e8   :  { %v1305_v26 = vmul.f32 %v2857_v54, %v1209_v39  ;;  %v1308_v10 = vmul.f32 %v2858_v1, %v1212_v56  ;;  %v1336_v50 = vadd.f32 %v1335_v13, %v1334_v48  ;;  %v1363_v7 = vadd.f32 %v1362_v0, %v1361_v36 }
 0x2e9   :  { %v2859_v49 = vunpack.c.h.bf16 %v2643_v4  ;;  %v1310_v25 = vmul.f32 %v1766_v37, %v1214_v44  ;;  %v1337_v55 = vsel %vm62_vm1, %v1306_v46, 0.0  ;;  %v1364_v57 = vsel %vm62_vm1, %v1303_v42, 0.0  ;;  %v2861_v37 = vld [vmem:[#allocation3_spill] sm:$0xff]  ;;  %v1936_v46 = vpop.permute.xlu0 %1935 }
 0x2ea   :  { %v1775_v33 = vunpack.c.h.bf16 %v2563_v24  ;;  %v1771_v16 = vunpack.c.h.bf16 %v1789_v47  ;;  %v1338_v14 = vadd.f32 %v1337_v55, %v1336_v50  ;;  %v1365_v59 = vadd.f32 %v1364_v57, %v1363_v7  ;;  %v1963_v42 = vld [vmem:[%s2832_s11 + $0x8] sm:$0xff]  }
 0x2eb   :  { %v1307_v45 = vmul.f32 %v2859_v49, %v1211_v34  ;;  %v1217_v58 = vmul.f32 %v2613_v53, %v2552_v63  ;;  %v2860_v32 = vunpack.c.h.bf16 %v2653_v18  ;;  %v1339_v4 = vsel %vm62_vm1, %v1308_v10, 0.0  ;;  %v2865_v10 = vld [vmem:[#allocation2_spill] sm:$0xff] }
 0x2ec   :  { %v1366_v61 = vsel %vm62_vm1, %v1305_v26, 0.0  ;;  %v1218_v20 = vmul.f32 %v2581_v22, %v2861_v37  ;;  %v1219_v5 = vmul.f32 %v2613_v53, %v2862_v17  ;;  %v1340_v35 = vadd.f32 %v1339_v4, %v1338_v14  ;;  %v1704_v14 = vld [vmem:[%s2834_s10] ss:$0 sm:$0xff] }
 0x2ed   :  { %v1309_v21 = vmul.f32 %v2860_v32, %v1213_v6  ;;  %v1367_v27 = vadd.f32 %v1366_v61, %v1365_v59  ;;  %v1311_v3 = vmul.f32 %v1767_v29, %v1215_v2  ;;  %v1312_v30 = vmul.f32 %v1770_v43, %v1216_v15  ;;  %v1708_v59 = vld [vmem:[%s2835_s12] ss:$0 sm:$0xff] }
 0x2ee   :  { %v1341_v63 = vsel %vm62_vm1, %v1310_v25, 0.0  ;;  %v1368_v18 = vsel %vm62_vm1, %v1307_v45, 0.0  ;;  %v1313_v41 = vmul.f32 %v1771_v16, %v1217_v58  ;;  %v2863_v22 = vunpack.c.l.bf16 %v2563_v24 }
 0x2ef   :  { %v1342_v39 = vadd.f32 %v1341_v63, %v1340_v35  ;;  %v1369_v56 = vadd.f32 %v1368_v18, %v1367_v27  ;;  %v1370_v40 = vsel %vm62_vm1, %v1309_v21, 0.0  ;;  %v1315_v53 = vmul.f32 %v1775_v33, %v1219_v5 }
 0x2f0   :  { %v1314_v12 = vmul.f32 %v2863_v22, %v1218_v20  ;;  %v1343_v31 = vsel %vm62_vm1, %v1312_v30, 0.0  ;;  %v1372_v52 = vsel %vm62_vm1, %v1311_v3, 0.0  ;;  %v1374_v9 = vsel %vm62_vm1, %v1313_v41, 0.0 }
 0x2f1   :  { %v1371_v47 = vadd.f32 %v1370_v40, %v1369_v56  ;;  %v1344_v29 = vadd.f32 %v1343_v31, %v1342_v39  ;;  %v1376_v34 = vsel %vm62_vm1, %v1315_v53, 0.0  ;;  %v2864_v24 = vmov 0.0  }
 0x2f2   :  { %v1345_v8 = vsel %vm62_vm1, %v1314_v12, 0.0  ;;  %v1938_v23 = vunpack.i.h.bf16 %v1936_v46  ;;  %v1937_v48 = vunpack.i.l.bf16 %v1936_v46  ;;  %v2866_v13 = vunpack.c.h.bf16 %v2865_v10 }
 0x2f3   :  { %v1373_v19 = vadd.f32 %v1372_v52, %v1371_v47  ;;  %v1346_v44 = vadd.f32 %v1345_v8, %v1344_v29  ;;  %v2867_v50 = vunpack.c.l.bf16 %v2865_v10 }
 0x2f4   :  { %v1453_v0 = vsel %vm62_vm1, %v2866_v13, %v1938_v23 }
 0x2f5   :  { %v1375_v60 = vadd.f32 %v1374_v9, %v1373_v19  ;;  %v1452_v7 = vsel %vm62_vm1, %v2867_v50, %v1937_v48 }
 0x2f7   :  { %v1377_v28 = vadd.f32 %v1376_v34, %v1375_v60 }
 0x2f9   :  { %v1378_v38 = vpack.c.bf16 %v1377_v28, %v1346_v44 }
 0x2fb   :  { %1912 = vmatmul.mubr.msk.bf16.vlgmr.msra.gmra.mrb[32].mxu1 %vm62_vm1, %v1378_v38 }
 0x2fc   :  { %1927 = vmatprep.mubr.msk.bf16.mxu1 %vm2163_vm0, %v2864_v24  ;;  %1924 = vmatpush3.bf16.msra.mxu1 %v1962_v62 }
 0x2fd   :  { %1925 = vmatprep.subr.bf16.mxu1 %v2864_v24 }
 0x300   :  { %1926 = vmatpush3.bf16.msra.mxu1 %v1963_v42 }
 0x3ce   :  { %v1431_v11 = vpop.f32.mrb[32].mxu1 }
 0x3cf   :  { %v1432_v6 = vadd.f32 %v1701_v51, %v1431_v11  ;;  %v1913_v43 = vpop.f32.mrb[33].mxu1 }
 0x3d0   :  { %v1434_v36 = vpop.f32.mrb[34].mxu1 }
 0x3d1   :  { %vm1438_vm2 = vcmp.gt.f32.partialorder %v1432_v6, 0.0  ;;  %v1440_v54 = vmul.f32 0.2, %v1432_v6  ;;  %v1435_v26 = vadd.f32 %v1701_v51, %v1434_v36  ;;  %v1914_v1 = vpop.f32.mrb[35].mxu1 }
 0x3d3   :  { %v1442_v2 = vsel %vm1438_vm2, %v1432_v6, %v1440_v54  ;;  %vm1439_vm3 = vcmp.gt.f32.partialorder %v1435_v26, 0.0  ;;  %v1441_v15 = vmul.f32 0.2, %v1435_v26 }
 0x3d4   :  { %v1454_v55 = vadd.f32 %v1452_v7, %v1442_v2  ;;  %v1525_v57 = vmul.f32 %v1452_v7, %v1442_v2 }
 0x3d5   :  { %v1443_v49 = vsel %vm1439_vm3, %v1435_v26, %v1441_v15 }
 0x3d6   :  { %v1455_v45 = vadd.f32 %v1453_v0, %v1443_v49  ;;  %v1526_v25 = vmul.f32 %v1453_v0, %v1443_v49 }
 0x3d8   :  { %v1456_v33 = vpack.c.bf16 %v1455_v45, %v1454_v55  ;;  %v1527_v16 = vpack.c.bf16 %v1526_v25, %v1525_v57 }
 0x3da   :  { %1920 = vmatmul.mubr.msk.bf16.vlgmr.msra.gmra.mrb[36].mxu0 %vm1480_vm4, %v1456_v33  ;;  %1928 = vmatmul.mubr.msk.bf16.vlgmr.msra.gmra.mrb[36].mxu1 %vm1480_vm4, %v1527_v16 }
 0x4ad   :  { %v1518_v58 = vpop.f32.mrb[36].mxu0  ;;  %v1588_v32 = vpop.f32.mrb[36].mxu1 }
 0x4ae   :  { %v1519_v21 = vadd.f32 %v1704_v14, %v1518_v58  ;;  %v1589_v4 = vadd.f32 %v1708_v59, %v1588_v32  ;;  %v1921_v61 = vpop.f32.mrb[37].mxu0  ;;  %v1929_v37 = vpop.f32.mrb[37].mxu1 }
 0x4af   :  { %v1521_v20 = vpop.f32.mrb[38].mxu0  ;;  %v1591_v17 = vpop.f32.mrb[38].mxu1 }
 0x4b0   :  { %vm1595_vm5 = vcmp.gt.f32.partialorder %v1519_v21, 0.0  ;;  %v1597_v5 = vmul.f32 0.2, %v1519_v21  ;;  %vm1601_vm6 = vcmp.gt.f32.partialorder %v1589_v4, 0.0  ;;  %v1603_v35 = vmul.f32 0.2, %v1589_v4 }
 0x4b1   :  { %v1522_v27 = vadd.f32 %v1704_v14, %v1521_v20  ;;  %v1592_v3 = vadd.f32 %v1708_v59, %v1591_v17  ;;  %v1922_v30 = vpop.f32.mrb[39].mxu0  ;;  %v1930_v63 = vpop.f32.mrb[39].mxu1 }
 0x4b2   :  { %v1599_v18 = vsel %vm1595_vm5, %v1519_v21, %v1597_v5  ;;  %v1605_v39 = vsel %vm1601_vm6, %v1589_v4, %v1603_v35 }
 0x4b3   :  { %v1607_v56 = vadd.f32 %v1605_v39, %v1599_v18  ;;  %vm1596_vm7 = vcmp.gt.f32.partialorder %v1522_v27, 0.0  ;;  %v1598_v41 = vmul.f32 0.2, %v1522_v27  ;;  %vm1602_vm8 = vcmp.gt.f32.partialorder %v1592_v3, 0.0 }
 0x4b4   :  { %v1604_v40 = vmul.f32 0.2, %v1592_v3 }
 0x4b5   :  { %1609 = vst [vmem:[%s2836_s13] sm:$0xff] %v1607_v56  ;;  %v1600_v47 = vsel %vm1596_vm7, %v1522_v27, %v1598_v41 }
 0x4b6   :  { %v1606_v22 = vsel %vm1602_vm8, %v1592_v3, %v1604_v40 }
 0x4b7   :  { %v1608_v12 = vadd.f32 %v1606_v22, %v1600_v47 }
 0x4b9   :  { %1610 = vst [vmem:[%s2836_s13 + $0x8] sm:$0xff] %v1608_v12 }

</bundles_post_ra>
